<compile_context>
chip_gen: v6e
topology: v6e:2x2x1
jax: 0.10.0
libtpu: 0.0.40
codegen_flags: <defaults>
</compile_context>

<pallas_src>
import functools

import jax
import jax.numpy as jnp
from jax.experimental import pallas as pl
from jax.experimental.pallas import tpu as pltpu


def _gnn_kernel(a_ref, h_ref, w_ref, o_ref, *, step, compute_dtype):
    # a_ref: [B, N, N]  raw adjacency (all batches, full array in VMEM)
    # h_ref: [B, N, D]  hidden state (f32)
    # w_ref: [2D, D]    W1 = [Wa; Wb]
    # o_ref: [B, N, D]  output
    B = a_ref.shape[0]
    D = h_ref.shape[-1]

    # f32 path: full-precision MXU emulation so the strict 1e-4 reference
    # check stays valid.  bf16 path (default): single native MXU pass.
    prec = jax.lax.Precision.HIGHEST if compute_dtype == jnp.float32 else None

    # Weight casts hoisted out of both loops (cast once per call).
    W = w_ref[...]
    Wa = W[:D, :].astype(compute_dtype)          # [D, D]
    Wb = W[D:, :].astype(compute_dtype)          # [D, D]

    # B and step are static Python ints -> fully unrolled at trace time; the
    # whole working set (a few KB per batch) stays resident in vregs/VMEM.
    for b in range(B):
        Ab = a_ref[b].astype(compute_dtype)      # [N, N], cast hoisted per batch
        Hb = h_ref[b]                            # [N, D], carried state stays f32
        for _ in range(step):
            Hc = Hb.astype(compute_dtype)
            # cat(A@H, H) @ W1  ==  A @ (H @ Wa) + H @ Wb   (fused, no concat).
            HWa = jnp.dot(Hc, Wa, preferred_element_type=jnp.float32,
                          precision=prec)                      # [N, D] f32
            HWb = jnp.dot(Hc, Wb, preferred_element_type=jnp.float32,
                          precision=prec)                      # [N, D] f32
            AH = jnp.dot(Ab, HWa.astype(compute_dtype),
                         preferred_element_type=jnp.float32,
                         precision=prec)                       # [N, D] f32
            Hb = jnp.tanh(AH + HWb)                            # f32 add + EUP tanh
        o_ref[b] = Hb.astype(o_ref.dtype)


@functools.partial(jax.jit, static_argnames=("step", "compute_dtype"))
def gnn_forward(A, hidden, W1, *, step, compute_dtype=jnp.bfloat16):
    """Pallas implementation of GNN.forward(A, hidden, for_pred)."""
    B, N, N2 = A.shape
    assert N2 == N
    D = hidden.shape[-1]
    assert hidden.shape == (B, N, D)
    assert W1.shape == (2 * D, D)

    kernel = functools.partial(_gnn_kernel, step=step, compute_dtype=compute_dtype)

    # Gridless single invocation: the entire (tiny) working set lives in VMEM
    # as full-array blocks -> zero per-grid-step overhead, one DMA per input,
    # one dispatch total.
    return pl.pallas_call(
        kernel,
        out_shape=jax.ShapeDtypeStruct((B, N, D), hidden.dtype),
        in_specs=[
            pl.BlockSpec(memory_space=pltpu.MemorySpace.VMEM),   # A
            pl.BlockSpec(memory_space=pltpu.MemorySpace.VMEM),   # hidden
            pl.BlockSpec(memory_space=pltpu.MemorySpace.VMEM),   # W1
        ],
        out_specs=pl.BlockSpec(memory_space=pltpu.MemorySpace.VMEM),
    )(A, hidden, W1)


def _xavier_uniform(key, shape, dtype=jnp.float32):
    fan_in, fan_out = shape
    bound = (6.0 / (fan_in + fan_out)) ** 0.5
    return jax.random.uniform(key, shape, dtype=dtype, minval=-bound, maxval=bound)


def _reference(A, hidden, W1, step):
    # Pure-JAX reference mirroring the PyTorch code exactly (true f32 matmuls).
    hp = jax.lax.Precision.HIGHEST
    H = hidden
    for _ in range(step):
        AH = jnp.einsum("bnm,bmd->bnd", A, H, precision=hp)
        cat = jnp.concatenate([AH, H], axis=2)
        H = jnp.tanh(jnp.einsum("bnk,kd->bnd", cat, W1, precision=hp))
    return H


def _reference_bf16_mxu(A, hidden, W1, step):
    # Reference that mirrors the kernel's bf16 rounding points exactly:
    # bf16 MXU operands, f32 accumulation, f32 add + tanh.
    D = hidden.shape[-1]
    Wa = W1[:D].astype(jnp.bfloat16)
    Wb = W1[D:].astype(jnp.bfloat16)
    Ab = A.astype(jnp.bfloat16)
    H = hidden
    for _ in range(step):
        Hc = H.astype(jnp.bfloat16)
        HWa = jnp.einsum("bnd,de->bne", Hc, Wa, preferred_element_type=jnp.float32)
        HWb = jnp.einsum("bnd,de->bne", Hc, Wb, preferred_element_type=jnp.float32)
        AH = jnp.einsum("bnm,bme->bne", Ab, HWa.astype(jnp.bfloat16),
                        preferred_element_type=jnp.float32)
        H = jnp.tanh(AH + HWb)
    return H


if __name__ == "__main__":
    # Small shapes consistent with the module: batch=2, seq(N)=8, dims_item=32.
    B, N, D = 2, 8, 32
    STEP = 2  # self.step

    key = jax.random.PRNGKey(0)
    k_a, k_h, k_w = jax.random.split(key, 3)

    A = jax.random.normal(k_a, (B, N, N), dtype=jnp.float32)
    hidden = jax.random.normal(k_h, (B, N, D), dtype=jnp.float32)
    W1 = _xavier_uniform(k_w, (2 * D, D))

    ref = _reference(A, hidden, W1, STEP)

    # Strict structural check: f32 + Precision.HIGHEST path vs exact reference.
    out_f32 = jax.block_until_ready(
        gnn_forward(A, hidden, W1, step=STEP, compute_dtype=jnp.float32))
    assert out_f32.shape == (B, N, D)
    assert jnp.allclose(out_f32, ref, atol=1e-4, rtol=1e-4), "f32 mismatch vs reference"

    # Default fast path: bf16 MXU operands, checked against a reference with
    # identical rounding points (much tighter than the old 0.25 threshold).
    out = jax.block_until_ready(gnn_forward(A, hidden, W1, step=STEP))
    ref_bf16 = _reference_bf16_mxu(A, hidden, W1, STEP)
    assert out.shape == (B, N, D)
    assert jnp.allclose(out, ref_bf16, atol=1e-2, rtol=1e-2), \
        "bf16 path mismatch vs bf16-mirrored reference"

    print("KERNEL_OK")
</pallas_src>

<mosaic_0001>
module attributes {stable_mosaic.version = 11 : i64} {
  func.func @_gnn_kernel(%arg0: memref<2x8x8xf32, #tpu.memory_space<vmem>>, %arg1: memref<2x8x32xf32, #tpu.memory_space<vmem>>, %arg2: memref<64x32xf32, #tpu.memory_space<vmem>>, %arg3: memref<2x8x32xf32, #tpu.memory_space<vmem>>) attributes {dimension_semantics = [], scalar_prefetch = 0 : i64, scratch_operands = 0 : i64, tpu.core_type = #tpu.core_type<tc>} {
    %c0 = arith.constant 0 : index
    %c0_0 = arith.constant 0 : index
    %0 = vector.load %arg2[%c0, %c0_0] : memref<64x32xf32, #tpu.memory_space<vmem>>, vector<64x32xf32>
    %1 = vector.extract_strided_slice %0 {offsets = [0, 0], sizes = [32, 32], strides = [1, 1]} : vector<64x32xf32> to vector<32x32xf32>
    %2 = vector.extract_strided_slice %0 {offsets = [32, 0], sizes = [32, 32], strides = [1, 1]} : vector<64x32xf32> to vector<32x32xf32>
    %c0_1 = arith.constant 0 : index
    %c0_2 = arith.constant 0 : index
    %c0_3 = arith.constant 0 : index
    %3 = vector.load %arg0[%c0_1, %c0_2, %c0_3] : memref<2x8x8xf32, #tpu.memory_space<vmem>>, vector<1x8x8xf32>
    %4 = vector.shape_cast %3 : vector<1x8x8xf32> to vector<8x8xf32>
    %c0_4 = arith.constant 0 : index
    %c0_5 = arith.constant 0 : index
    %c0_6 = arith.constant 0 : index
    %5 = vector.load %arg1[%c0_4, %c0_5, %c0_6] : memref<2x8x32xf32, #tpu.memory_space<vmem>>, vector<1x8x32xf32>
    %6 = vector.shape_cast %5 : vector<1x8x32xf32> to vector<8x32xf32>
    %cst = arith.constant dense<0.000000e+00> : vector<8x32xf32>
    %7 = tpu.matmul %6, %1, %cst {dimension_numbers = #tpu.dot_dimension_numbers<[1], [0], [0], [1], [0, 0, 1, 1], [], []>, precision = #tpu.contract_precision<fp32>} : vector<8x32xf32>, vector<32x32xf32>, vector<8x32xf32> -> vector<8x32xf32>
    %cst_7 = arith.constant dense<0.000000e+00> : vector<8x32xf32>
    %8 = tpu.matmul %6, %2, %cst_7 {dimension_numbers = #tpu.dot_dimension_numbers<[1], [0], [0], [1], [0, 0, 1, 1], [], []>, precision = #tpu.contract_precision<fp32>} : vector<8x32xf32>, vector<32x32xf32>, vector<8x32xf32> -> vector<8x32xf32>
    %cst_8 = arith.constant dense<0.000000e+00> : vector<8x32xf32>
    %9 = tpu.matmul %4, %7, %cst_8 {dimension_numbers = #tpu.dot_dimension_numbers<[1], [0], [0], [1], [0, 0, 1, 1], [], []>, precision = #tpu.contract_precision<fp32>} : vector<8x8xf32>, vector<8x32xf32>, vector<8x32xf32> -> vector<8x32xf32>
    %10 = arith.addf %9, %8 : vector<8x32xf32>
    %11 = math.tanh %10 : vector<8x32xf32>
    %cst_9 = arith.constant dense<0.000000e+00> : vector<8x32xf32>
    %12 = tpu.matmul %11, %1, %cst_9 {dimension_numbers = #tpu.dot_dimension_numbers<[1], [0], [0], [1], [0, 0, 1, 1], [], []>, precision = #tpu.contract_precision<fp32>} : vector<8x32xf32>, vector<32x32xf32>, vector<8x32xf32> -> vector<8x32xf32>
    %cst_10 = arith.constant dense<0.000000e+00> : vector<8x32xf32>
    %13 = tpu.matmul %11, %2, %cst_10 {dimension_numbers = #tpu.dot_dimension_numbers<[1], [0], [0], [1], [0, 0, 1, 1], [], []>, precision = #tpu.contract_precision<fp32>} : vector<8x32xf32>, vector<32x32xf32>, vector<8x32xf32> -> vector<8x32xf32>
    %cst_11 = arith.constant dense<0.000000e+00> : vector<8x32xf32>
    %14 = tpu.matmul %4, %12, %cst_11 {dimension_numbers = #tpu.dot_dimension_numbers<[1], [0], [0], [1], [0, 0, 1, 1], [], []>, precision = #tpu.contract_precision<fp32>} : vector<8x8xf32>, vector<8x32xf32>, vector<8x32xf32> -> vector<8x32xf32>
    %15 = arith.addf %14, %13 : vector<8x32xf32>
    %16 = math.tanh %15 : vector<8x32xf32>
    %c0_12 = arith.constant 0 : index
    %c0_13 = arith.constant 0 : index
    %c0_14 = arith.constant 0 : index
    %17 = vector.load %arg3[%c0_12, %c0_13, %c0_14] : memref<2x8x32xf32, #tpu.memory_space<vmem>>, vector<1x8x32xf32>
    %18 = vector.shape_cast %17 : vector<1x8x32xf32> to vector<8x32xf32>
    %19 = vector.shape_cast %16 : vector<8x32xf32> to vector<1x8x32xf32>
    tpu.vector_store %arg3[%c0_12, %c0_13, %c0_14], %19 {strides = array<i32>} : memref<2x8x32xf32, #tpu.memory_space<vmem>>, vector<1x8x32xf32>,
    %c1 = arith.constant 1 : index
    %c0_15 = arith.constant 0 : index
    %c0_16 = arith.constant 0 : index
    %20 = vector.load %arg0[%c1, %c0_15, %c0_16] : memref<2x8x8xf32, #tpu.memory_space<vmem>>, vector<1x8x8xf32>
    %21 = vector.shape_cast %20 : vector<1x8x8xf32> to vector<8x8xf32>
    %c1_17 = arith.constant 1 : index
    %c0_18 = arith.constant 0 : index
    %c0_19 = arith.constant 0 : index
    %22 = vector.load %arg1[%c1_17, %c0_18, %c0_19] : memref<2x8x32xf32, #tpu.memory_space<vmem>>, vector<1x8x32xf32>
    %23 = vector.shape_cast %22 : vector<1x8x32xf32> to vector<8x32xf32>
    %cst_20 = arith.constant dense<0.000000e+00> : vector<8x32xf32>
    %24 = tpu.matmul %23, %1, %cst_20 {dimension_numbers = #tpu.dot_dimension_numbers<[1], [0], [0], [1], [0, 0, 1, 1], [], []>, precision = #tpu.contract_precision<fp32>} : vector<8x32xf32>, vector<32x32xf32>, vector<8x32xf32> -> vector<8x32xf32>
    %cst_21 = arith.constant dense<0.000000e+00> : vector<8x32xf32>
    %25 = tpu.matmul %23, %2, %cst_21 {dimension_numbers = #tpu.dot_dimension_numbers<[1], [0], [0], [1], [0, 0, 1, 1], [], []>, precision = #tpu.contract_precision<fp32>} : vector<8x32xf32>, vector<32x32xf32>, vector<8x32xf32> -> vector<8x32xf32>
    %cst_22 = arith.constant dense<0.000000e+00> : vector<8x32xf32>
    %26 = tpu.matmul %21, %24, %cst_22 {dimension_numbers = #tpu.dot_dimension_numbers<[1], [0], [0], [1], [0, 0, 1, 1], [], []>, precision = #tpu.contract_precision<fp32>} : vector<8x8xf32>, vector<8x32xf32>, vector<8x32xf32> -> vector<8x32xf32>
    %27 = arith.addf %26, %25 : vector<8x32xf32>
    %28 = math.tanh %27 : vector<8x32xf32>
    %cst_23 = arith.constant dense<0.000000e+00> : vector<8x32xf32>
    %29 = tpu.matmul %28, %1, %cst_23 {dimension_numbers = #tpu.dot_dimension_numbers<[1], [0], [0], [1], [0, 0, 1, 1], [], []>, precision = #tpu.contract_precision<fp32>} : vector<8x32xf32>, vector<32x32xf32>, vector<8x32xf32> -> vector<8x32xf32>
    %cst_24 = arith.constant dense<0.000000e+00> : vector<8x32xf32>
    %30 = tpu.matmul %28, %2, %cst_24 {dimension_numbers = #tpu.dot_dimension_numbers<[1], [0], [0], [1], [0, 0, 1, 1], [], []>, precision = #tpu.contract_precision<fp32>} : vector<8x32xf32>, vector<32x32xf32>, vector<8x32xf32> -> vector<8x32xf32>
    %cst_25 = arith.constant dense<0.000000e+00> : vector<8x32xf32>
    %31 = tpu.matmul %21, %29, %cst_25 {dimension_numbers = #tpu.dot_dimension_numbers<[1], [0], [0], [1], [0, 0, 1, 1], [], []>, precision = #tpu.contract_precision<fp32>} : vector<8x8xf32>, vector<8x32xf32>, vector<8x32xf32> -> vector<8x32xf32>
    %32 = arith.addf %31, %30 : vector<8x32xf32>
    %33 = math.tanh %32 : vector<8x32xf32>
    %c1_26 = arith.constant 1 : index
    %c0_27 = arith.constant 0 : index
    %c0_28 = arith.constant 0 : index
    %34 = vector.load %arg3[%c1_26, %c0_27, %c0_28] : memref<2x8x32xf32, #tpu.memory_space<vmem>>, vector<1x8x32xf32>
    %35 = vector.shape_cast %34 : vector<1x8x32xf32> to vector<8x32xf32>
    %36 = vector.shape_cast %33 : vector<8x32xf32> to vector<1x8x32xf32>
    tpu.vector_store %arg3[%c1_26, %c0_27, %c0_28], %36 {strides = array<i32>} : memref<2x8x32xf32, #tpu.memory_space<vmem>>, vector<1x8x32xf32>,
    return
  }
}

</mosaic_0001>

<bundles_post_ra>
// kernel: gnn_forward.1
= control target key start
LH: loop header
LB: loop body
LE: loop exit
PB: predicated region body
PF: predicated region fallthrough
CT: control target
= control target key end

     0   :  { %vm25_vm0 = vcmask 261120   ;;  %v6709_v3 = vmov 0.0   ;;  %vm6710_vm1 = vmmov 0   ;;  %s7568_s0 = inlined_call_operand.vmem [shape: f32[2,8,8], index: 0, kind: input, shape index: {}]   ;;  %s7569_s1 = inlined_call_operand.vmem [shape: f32[2,8,32], index: 1, kind: input, shape index: {}]   ;;  %s7570_s2 = inlined_call_operand.vmem [shape: f32[64,32], index: 2, kind: input, shape index: {}]   ;;  %s7571_s3 = inlined_call_operand.hbm [shape: f32[2,8,32], index: 3, kind: output, shape index: {}]  }
   0x1   :  { %v18_v0 = vld [vmem:[%s7570_s2 + $0x18] sm:$0xff]  ;;  %v17_v1 = vld [vmem:[%s7570_s2 + $0x10] sm:$0xff]  ;;  %v16_v2 = vld [vmem:[%s7570_s2 + $0x8] sm:$0xff]  ;;  %6026 = vmatprep.subr.mxu0 %v6709_v3  ;;  %6037 = vmatprep.subr.mxu1 %v6709_v3 }
   0x2   :  { %v6744_v4 = vand.u32 4294901760, %v18_v0  ;;  %v6746_v5 = vand.u32 4294901760, %v17_v1  ;;  %v6748_v6 = vand.u32 4294901760, %v16_v2  ;;  %v15_v7 = vld [vmem:[%s7570_s2] sm:$0xff]  ;;  %6034 = vmatprep.mubr.msk.f32.mxu0 %vm6710_vm1, %v6709_v3  ;;  %6045 = vmatprep.mubr.msk.f32.mxu1 %vm6710_vm1, %v6709_v3 }
   0x3   :  { %v24_v8 = vld [vmem:[%s7569_s1] sm:$0xff]  ;;  %v6757_v9 = vand.u32 4294901760, %v15_v7 }
   0x4   :  { %v27_v10 = vsel %vm25_vm0, %v24_v8, 0  ;;  %6027 = vmatpush3.msra.mxu0 %v6744_v4  ;;  %v6766_v11 = vsub.f32 %v18_v0, %v6744_v4  ;;  %v6771_v13 = vsub.f32 %v17_v1, %v6746_v5  ;;  %v6774_v14 = vsub.f32 %v16_v2, %v6748_v6 }
   0x5   :  { %v6768_v12 = vand.u32 4294901760, %v27_v10 }
   0x6   :  { %8 = vsyncpa [#allocation3], 0  ;;  %6028 = vmatprep.subr.mxu0 %v6709_v3  ;;  %v6778_v15 = vsub.f32 %v15_v7, %v6757_v9  ;;  %v6782_v16 = vand.u32 4294901760, %v6766_v11  ;;  %v6788_v18 = vand.u32 4294901760, %v6771_v13  ;;  %v6791_v19 = vand.u32 4294901760, %v6774_v14  ;;  %v22_v32 = vld [vmem:[%s7570_s2 + $0x38] sm:$0xff] }
   0x7   :  { %6029 = vmatpush3.msra.mxu0 %v6746_v5  ;;  %v6785_v17 = vsub.f32 %v27_v10, %v6768_v12  ;;  %v21_v33 = vld [vmem:[%s7570_s2 + $0x30] sm:$0xff]  ;;  %v6846_v34 = vand.u32 4294901760, %v22_v32  ;;  %v20_v42 = vld [vmem:[%s7570_s2 + $0x28] sm:$0xff]  ;;  %v19_v46 = vld [vmem:[%s7570_s2 + $0x20] sm:$0xff]  ;;  %vm999_vm2 = vcmask 64512  }
   0x8   :  { %6030 = vmatprep.subr.mxu0 %v6709_v3  ;;  %v6795_v20 = vand.u32 4294901760, %v6778_v15  ;;  %v136_v21 = vsub.f32 %v6766_v11, %v6782_v16  ;;  %v143_v23 = vsub.f32 %v6771_v13, %v6788_v18  ;;  %v150_v24 = vsub.f32 %v6774_v14, %v6791_v19  ;;  %v23_v59 = vld [vmem:[%s7568_s0] sm:$0xff] }
   0x9   :  { %6031 = vmatpush3.msra.mxu0 %v6748_v6  ;;  %v6801_v22 = vand.u32 4294901760, %v6785_v17  ;;  %v6853_v35 = vand.u32 4294901760, %v21_v33  ;;  %v6860_v36 = vsub.f32 %v22_v32, %v6846_v34  ;;  %v6911_v44 = vand.u32 4294901760, %v20_v42 }
   0xa   :  { %6032 = vmatprep.subr.mxu0 %v6709_v3  ;;  %v6809_v25 = vand.u32 4294901760, %v136_v21  ;;  %v6813_v27 = vand.u32 4294901760, %v143_v23  ;;  %v157_v28 = vsub.f32 %v6778_v15, %v6795_v20  ;;  %v6821_v30 = vand.u32 4294901760, %v150_v24 }
   0xb   :  { %6033 = vmatpush3.msra.mxu0 %v6757_v9  ;;  %v101_v26 = vsub.f32 %v6785_v17, %v6801_v22  ;;  %v6867_v37 = vsub.f32 %v21_v33, %v6853_v35  ;;  %v6875_v38 = vand.u32 4294901760, %v6860_v36  ;;  %v6930_v47 = vand.u32 4294901760, %v19_v46 }
   0xc   :  { %6048 = vmatprep.subr.mxu0 %v6709_v3  ;;  %6038 = vmatpush3.msra.mxu1 %v6809_v25  ;;  %v6826_v31 = vand.u32 4294901760, %v157_v28  ;;  %v6933_v48 = vsub.f32 %v20_v42, %v6911_v44  ;;  %v1001_v62 = vsel %vm999_vm2, %v23_v59, 0 }
   0xd   :  { %v6819_v29 = vand.u32 4294901760, %v101_v26  ;;  %6039 = vmatprep.subr.mxu1 %v6709_v3  ;;  %v6882_v39 = vand.u32 4294901760, %v6867_v37  ;;  %v621_v40 = vsub.f32 %v6860_v36, %v6875_v38  ;;  %v6940_v50 = vsub.f32 %v19_v46, %v6930_v47 }
   0xe   :  { %6040 = vmatpush3.msra.mxu1 %v6813_v27  ;;  %v6937_v49 = vand.u32 4294901760, %v6933_v48  ;;  %v7012_v0 = vand.u32 4294901760, %v1001_v62 }
   0xf   :  { %6035 = vmatmul.mubr.f32.vlgmr.msra.gmra.mxu0 %v6819_v29  ;;  %6041 = vmatprep.subr.mxu1 %v6709_v3  ;;  %v628_v41 = vsub.f32 %v6867_v37, %v6882_v39  ;;  %v6905_v43 = vand.u32 4294901760, %v621_v40  ;;  %v6947_v52 = vand.u32 4294901760, %v6940_v50 }
  0x10   :  { %6049 = vmatpush3.msra.mxu0 %v6766_v11  ;;  %6042 = vmatpush3.msra.mxu1 %v6821_v30  ;;  %v635_v51 = vsub.f32 %v6933_v48, %v6937_v49  ;;  %v7015_v7 = vsub.f32 %v1001_v62, %v7012_v0 }
  0x11   :  { %6050 = vmatprep.subr.mxu0 %v6709_v3  ;;  %6043 = vmatprep.subr.mxu1 %v6709_v3  ;;  %v6913_v45 = vand.u32 4294901760, %v628_v41  ;;  %v642_v54 = vsub.f32 %v6940_v50, %v6947_v52 }
  0x12   :  { %6051 = vmatpush3.msra.mxu0 %v6771_v13  ;;  %6044 = vmatpush3.msra.mxu1 %v6826_v31  ;;  %v6953_v53 = vand.u32 4294901760, %v635_v51 }
  0x13   :  { %6052 = vmatprep.subr.mxu0 %v6709_v3  ;;  %6046 = vmatmul.mubr.f32.vlgmr.msra.gmra.mxu1 %v6768_v12  ;;  %v6960_v55 = vand.u32 4294901760, %v642_v54 }
  0x14   :  { %6053 = vmatpush3.msra.mxu0 %v6774_v14  ;;  %6059 = vmatprep.subr.mxu1 %v6709_v3 }
  0x15   :  { %6054 = vmatprep.subr.mxu0 %v6709_v3  ;;  %6056 = vmatprep.mubr.msk.f32.mxu0 %vm6710_vm1, %v6709_v3 }
  0x16   :  { %6055 = vmatpush3.msra.mxu0 %v6778_v15  ;;  %6060 = vmatpush3.msra.mxu1 %v6744_v4 }
  0x17   :  { %6057 = vmatmul.mubr.f32.vlgmr.msra.gmra.mxu0 %v6785_v17  ;;  %6061 = vmatprep.subr.mxu1 %v6709_v3 }
  0x18   :  { %6070 = vmatprep.subr.mxu0 %v6709_v3  ;;  %6062 = vmatpush3.msra.mxu1 %v6746_v5 }
  0x19   :  { %6071 = vmatpush3.msra.mxu0 %v6782_v16  ;;  %6063 = vmatprep.subr.mxu1 %v6709_v3 }
  0x1a   :  { %6072 = vmatprep.subr.mxu0 %v6709_v3  ;;  %6064 = vmatpush3.msra.mxu1 %v6748_v6 }
  0x1b   :  { %6073 = vmatpush3.msra.mxu0 %v6788_v18  ;;  %6065 = vmatprep.subr.mxu1 %v6709_v3 }
  0x1c   :  { %6074 = vmatprep.subr.mxu0 %v6709_v3  ;;  %6066 = vmatpush3.msra.mxu1 %v6757_v9 }
  0x1d   :  { %6067 = vmatprep.mubr.msk.f32.mxu1 %vm6710_vm1, %v6709_v3  ;;  %6075 = vmatpush3.msra.mxu0 %v6791_v19 }
  0x1e   :  { %6068 = vmatmul.mubr.f32.vlgmr.msra.gmra.mxu1 %v6801_v22  ;;  %6076 = vmatprep.subr.mxu0 %v6709_v3 }
  0x1f   :  { %6081 = vmatprep.subr.mxu1 %v6709_v3  ;;  %6077 = vmatpush3.msra.mxu0 %v6795_v20 }
  0x20   :  { %6078 = vmatprep.mubr.msk.f32.mxu0 %vm6710_vm1, %v6709_v3  ;;  %6082 = vmatpush3.msra.mxu1 %v6744_v4 }
  0x21   :  { %6079 = vmatmul.mubr.f32.vlgmr.msra.gmra.mxu0 %v6768_v12  ;;  %6083 = vmatprep.subr.mxu1 %v6709_v3 }
  0x22   :  { %6089 = vmatprep.mubr.msk.f32.mxu1 %vm6710_vm1, %v6709_v3  ;;  %6084 = vmatpush3.msra.mxu1 %v6746_v5 }
  0x23   :  { %6092 = vmatprep.subr.mxu0 %v6709_v3  ;;  %6085 = vmatprep.subr.mxu1 %v6709_v3 }
  0x24   :  { %6093 = vmatpush3.msra.mxu0 %v6846_v34  ;;  %6086 = vmatpush3.msra.mxu1 %v6748_v6 }
  0x25   :  { %6094 = vmatprep.subr.mxu0 %v6709_v3  ;;  %6087 = vmatprep.subr.mxu1 %v6709_v3 }
  0x26   :  { %6095 = vmatpush3.msra.mxu0 %v6853_v35  ;;  %6088 = vmatpush3.msra.mxu1 %v6757_v9 }
  0x27   :  { %6096 = vmatprep.subr.mxu0 %v6709_v3  ;;  %6090 = vmatmul.mubr.f32.vlgmr.msra.gmra.mxu1 %v6768_v12 }
  0x28   :  { %6103 = vmatprep.subr.mxu1 %v6709_v3  ;;  %6097 = vmatpush3.msra.mxu0 %v6911_v44 }
  0x29   :  { %6104 = vmatpush3.msra.mxu1 %v6905_v43  ;;  %6098 = vmatprep.subr.mxu0 %v6709_v3 }
  0x2a   :  { %6105 = vmatprep.subr.mxu1 %v6709_v3  ;;  %6100 = vmatprep.mubr.msk.f32.mxu0 %vm6710_vm1, %v6709_v3 }
  0x2b   :  { %6106 = vmatpush3.msra.mxu1 %v6913_v45  ;;  %6111 = vmatprep.mubr.msk.f32.mxu1 %vm6710_vm1, %v6709_v3 }
  0x2c   :  { %6107 = vmatprep.subr.mxu1 %v6709_v3  ;;  %6099 = vmatpush3.msra.mxu0 %v6930_v47 }
  0x2d   :  { %6114 = vmatprep.subr.mxu0 %v6709_v3  ;;  %6101 = vmatmul.mubr.f32.vlgmr.msra.gmra.mxu0 %v6819_v29 }
  0x2e   :  { %6115 = vmatpush3.msra.mxu0 %v6860_v36  ;;  %6122 = vmatprep.mubr.msk.f32.mxu0 %vm6710_vm1, %v6709_v3 }
  0x2f   :  { %6116 = vmatprep.subr.mxu0 %v6709_v3  ;;  %6108 = vmatpush3.msra.mxu1 %v6953_v53 }
  0x30   :  { %6117 = vmatpush3.msra.mxu0 %v6867_v37  ;;  %6109 = vmatprep.subr.mxu1 %v6709_v3 }
  0x31   :  { %6118 = vmatprep.subr.mxu0 %v6709_v3  ;;  %6110 = vmatpush3.msra.mxu1 %v6960_v55 }
  0x32   :  { %6119 = vmatpush3.msra.mxu0 %v6933_v48  ;;  %6125 = vmatprep.subr.mxu1 %v6709_v3 }
  0x33   :  { %6120 = vmatprep.subr.mxu0 %v6709_v3  ;;  %6112 = vmatmul.mubr.f32.vlgmr.msra.gmra.mxu1 %v6768_v12 }
  0x34   :  { %6121 = vmatpush3.msra.mxu0 %v6940_v50  ;;  %6126 = vmatpush3.msra.mxu1 %v6846_v34 }
  0x35   :  { %6136 = vmatprep.subr.mxu0 %v6709_v3  ;;  %6127 = vmatprep.subr.mxu1 %v6709_v3 }
  0x36   :  { %6123 = vmatmul.mubr.f32.vlgmr.msra.gmra.mxu0 %v6785_v17  ;;  %6128 = vmatpush3.msra.mxu1 %v6853_v35  ;;  %v7018_v17 = vand.u32 4294901760, %v7015_v7 }
  0x37   :  { %6137 = vmatpush3.msra.mxu0 %v6875_v38  ;;  %6129 = vmatprep.subr.mxu1 %v6709_v3 }
  0x38   :  { %6133 = vmatprep.mubr.msk.f32.mxu1 %vm6710_vm1, %v6709_v3  ;;  %6130 = vmatpush3.msra.mxu1 %v6911_v44  ;;  %v1072_v23 = vsub.f32 %v7015_v7, %v7018_v17 }
  0x39   :  { %6138 = vmatprep.subr.mxu0 %v6709_v3  ;;  %6131 = vmatprep.subr.mxu1 %v6709_v3 }
  0x3a   :  { %6139 = vmatpush3.msra.mxu0 %v6882_v39  ;;  %6132 = vmatpush3.msra.mxu1 %v6930_v47  ;;  %v7022_v32 = vand.u32 4294901760, %v1072_v23 }
  0x3b   :  { %6140 = vmatprep.subr.mxu0 %v6709_v3  ;;  %6147 = vmatprep.subr.mxu1 %v6709_v3 }
  0x3c   :  { %6134 = vmatmul.mubr.f32.vlgmr.msra.gmra.mxu1 %v6801_v22  ;;  %6141 = vmatpush3.msra.mxu0 %v6937_v49 }
  0x3d   :  { %6148 = vmatpush3.msra.mxu1 %v6846_v34  ;;  %6142 = vmatprep.subr.mxu0 %v6709_v3 }
  0x3e   :  { %6149 = vmatprep.subr.mxu1 %v6709_v3  ;;  %6143 = vmatpush3.msra.mxu0 %v6947_v52 }
  0x3f   :  { %6150 = vmatpush3.msra.mxu1 %v6853_v35  ;;  %6144 = vmatprep.mubr.msk.f32.mxu0 %vm6710_vm1, %v6709_v3 }
  0x40   :  { %6151 = vmatprep.subr.mxu1 %v6709_v3  ;;  %6145 = vmatmul.mubr.f32.vlgmr.msra.gmra.mxu0 %v6768_v12 }
  0x41   :  { %6152 = vmatpush3.msra.mxu1 %v6911_v44  ;;  %6155 = vmatprep.mubr.msk.f32.mxu1 %vm6710_vm1, %v6709_v3 }
  0x42   :  { %6153 = vmatprep.subr.mxu1 %v6709_v3  ;;  %6158 = vmatprep.subr.mxu0 %v6709_v3 }
  0x43   :  { %6154 = vmatpush3.msra.mxu1 %v6930_v47  ;;  %6160 = vmatprep.mubr.msk.f32.mxu0 %vm6710_vm1, %v6709_v3 }
  0x44   :  { %6156 = vmatmul.mubr.f32.vlgmr.msra.gmra.mxu1 %v6768_v12  ;;  %6163 = vmatprep.subr.mxu1 %v6709_v3 }
  0x45   :  { %6165 = vmatprep.mubr.msk.f32.mxu1 %vm6710_vm1, %v6709_v3 }
  0xcf   :  { %v104_v56 = vpop.f32.mrf.mxu0 }
  0xd1   :  { %v6036_v57 = vpop.f32.mrf.mxu0 }
  0xd3   :  { %v195_v58 = vpop.f32.mrf.mxu1 }
  0xd4   :  { %v196_v1 = vadd.f32 %v195_v58, %v104_v56 }
  0xd5   :  { %v6047_v60 = vpop.f32.mrf.mxu1 }
  0xd7   :  { %v275_v61 = vpop.f32.mrf.mxu0 }
  0xd8   :  { %v276_v10 = vadd.f32 %v275_v61, %v196_v1 }
  0xd9   :  { %v6058_v63 = vpop.f32.mrf.mxu0 }
  0xde   :  { %v352_v2 = vpop.f32.mrf.mxu1 }
  0xdf   :  { %v353_v21 = vadd.f32 %v352_v2, %v276_v10 }
  0xe0   :  { %v6069_v8 = vpop.f32.mrf.mxu1 }
  0xe1   :  { %v435_v12 = vpop.f32.mrf.mxu0 }
  0xe2   :  { %v436_v24 = vadd.f32 %v435_v12, %v353_v21 }
  0xe3   :  { %v6080_v22 = vpop.f32.mrf.mxu0 }
  0xe7   :  { %v510_v26 = vpop.f32.mrf.mxu1 }
  0xe8   :  { %v511_v28 = vadd.f32 %v510_v26, %v436_v24 }
  0xe9   :  { %v6091_v29 = vpop.f32.mrf.mxu1 }
  0xea   :  { %v1034_v33 = vand.u32 4294901760, %v511_v28 }
  0xec   :  { %v1111_v40 = vsub.f32 %v511_v28, %v1034_v33  ;;  %6159 = vmatpush3.msra.mxu0 %v1034_v33 }
  0xed   :  { %6161 = vmatmul.mubr.f32.vlgmr.msra.gmra.mxu0 %v7022_v32  ;;  %6168 = vmatprep.subr.mxu0 %v6709_v3  ;;  %v589_v51 = vpop.f32.mrf.mxu0 }
  0xee   :  { %v1112_v41 = vand.u32 4294901760, %v1111_v40  ;;  %6169 = vmatpush3.msra.mxu0 %v1111_v40  ;;  %6170 = vmatprep.mubr.msk.f32.mxu0 %vm6710_vm1, %v6709_v3 }
  0xef   :  { %6178 = vmatprep.subr.mxu0 %v6709_v3  ;;  %v6102_v54 = vpop.f32.mrf.mxu0 }
  0xf0   :  { %v1113_v42 = vsub.f32 %v1111_v40, %v1112_v41 }
  0xf1   :  { %6171 = vmatmul.mubr.f32.vlgmr.msra.gmra.mxu0 %v7015_v7 }
  0xf2   :  { %6179 = vmatpush3.msra.mxu0 %v1112_v41  ;;  %v1114_v46 = vand.u32 4294901760, %v1113_v42  ;;  %6180 = vmatprep.mubr.msk.f32.mxu0 %vm6710_vm1, %v6709_v3 }
  0xf3   :  { %6188 = vmatprep.subr.mxu0 %v6709_v3  ;;  %v680_v56 = vpop.f32.mrf.mxu1 }
  0xf4   :  { %6164 = vmatpush3.msra.mxu1 %v1114_v46  ;;  %v681_v57 = vadd.f32 %v680_v56, %v589_v51 }
  0xf5   :  { %6166 = vmatmul.mubr.f32.vlgmr.msra.gmra.mxu1 %v7012_v0  ;;  %6173 = vmatprep.subr.mxu1 %v6709_v3  ;;  %v6113_v58 = vpop.f32.mrf.mxu1 }
  0xf6   :  { %6174 = vmatpush3.msra.mxu1 %v1034_v33  ;;  %6175 = vmatprep.mubr.msk.f32.mxu1 %vm6710_vm1, %v6709_v3  ;;  %v760_v59 = vpop.f32.mrf.mxu0 }
  0xf7   :  { %6183 = vmatprep.subr.mxu1 %v6709_v3  ;;  %6181 = vmatmul.mubr.f32.vlgmr.msra.gmra.mxu0 %v7012_v0  ;;  %v761_v60 = vadd.f32 %v760_v59, %v681_v57 }
  0xf8   :  { %6189 = vmatpush3.msra.mxu0 %v6744_v4  ;;  %6196 = vmatprep.mubr.msk.f32.mxu0 %vm6710_vm1, %v6709_v3  ;;  %v6124_v61 = vpop.f32.mrf.mxu0 }
  0xf9   :  { %6176 = vmatmul.mubr.f32.vlgmr.msra.gmra.mxu1 %v7018_v17  ;;  %6190 = vmatprep.subr.mxu0 %v6709_v3 }
  0xfa   :  { %6184 = vmatpush3.msra.mxu1 %v1034_v33  ;;  %6185 = vmatprep.mubr.msk.f32.mxu1 %vm6710_vm1, %v6709_v3 }
  0xfb   :  { %6199 = vmatprep.subr.mxu1 %v6709_v3  ;;  %6191 = vmatpush3.msra.mxu0 %v6746_v5 }
  0xfc   :  { %6192 = vmatprep.subr.mxu0 %v6709_v3  ;;  %v837_v62 = vpop.f32.mrf.mxu1 }
  0xfd   :  { %6186 = vmatmul.mubr.f32.vlgmr.msra.gmra.mxu1 %v7012_v0  ;;  %6193 = vmatpush3.msra.mxu0 %v6748_v6  ;;  %v838_v63 = vadd.f32 %v837_v62, %v761_v60 }
  0xfe   :  { %6200 = vmatpush3.msra.mxu1 %v6809_v25  ;;  %6207 = vmatprep.mubr.msk.f32.mxu1 %vm6710_vm1, %v6709_v3  ;;  %v6135_v1 = vpop.f32.mrf.mxu1 }
  0xff   :  { %6201 = vmatprep.subr.mxu1 %v6709_v3  ;;  %6194 = vmatprep.subr.mxu0 %v6709_v3 }
 0x100   :  { %6202 = vmatpush3.msra.mxu1 %v6813_v27  ;;  %6195 = vmatpush3.msra.mxu0 %v6757_v9  ;;  %v920_v2 = vpop.f32.mrf.mxu0 }
 0x101   :  { %6203 = vmatprep.subr.mxu1 %v6709_v3  ;;  %6210 = vmatprep.subr.mxu0 %v6709_v3  ;;  %v921_v8 = vadd.f32 %v920_v2, %v838_v63 }
 0x102   :  { %6204 = vmatpush3.msra.mxu1 %v6821_v30  ;;  %v6146_v10 = vpop.f32.mrf.mxu0 }
 0x103   :  { %6205 = vmatprep.subr.mxu1 %v6709_v3 }
 0x104   :  { %6206 = vmatpush3.msra.mxu1 %v6826_v31  ;;  %v995_v12 = vpop.f32.mrf.mxu1 }
 0x105   :  { %6221 = vmatprep.subr.mxu1 %v6709_v3  ;;  %v996_v21 = vadd.f32 %v995_v12, %v921_v8 }
 0x106   :  { %v6157_v22 = vpop.f32.mrf.mxu1 }
 0x1ad   :  { %v1075_v23 = vpop.f32.mrf.mxu0 }
 0x1ae   :  { %v1076_v29 = vadd.f32 %v1075_v23, %v996_v21 }
 0x1af   :  { %v6162_v24 = vpop.f32.mrf.mxu0 }
 0x1b1   :  { %v1225_v26 = vpop.f32.mrf.mxu0 }
 0x1b3   :  { %v6172_v28 = vpop.f32.mrf.mxu0 }
 0x1b5   :  { %v1151_v33 = vpop.f32.mrf.mxu1 }
 0x1b6   :  { %v1152_v40 = vadd.f32 %v1151_v33, %v1076_v29 }
 0x1b7   :  { %v6167_v41 = vpop.f32.mrf.mxu1  ;;  %v1373_v42 = vpop.f32.mrf.mxu0 }
 0x1b8   :  { %v1226_v46 = vadd.f32 %v1225_v26, %v1152_v40 }
 0x1b9   :  { %v1299_v51 = vpop.f32.mrf.mxu1  ;;  %v6182_v54 = vpop.f32.mrf.mxu0 }
 0x1ba   :  { %v1300_v56 = vadd.f32 %v1299_v51, %v1226_v46 }
 0x1bb   :  { %v6177_v57 = vpop.f32.mrf.mxu1 }
 0x1bc   :  { %v1374_v58 = vadd.f32 %v1373_v42, %v1300_v56 }
 0x1bd   :  { %v1445_v59 = vpop.f32.mrf.mxu1 }
 0x1be   :  { %v1446_v60 = vadd.f32 %v1445_v59, %v1374_v58  ;;  %v5737_v58 = vld [vmem:[%s7569_s1 + $0x8] sm:$0xff] }
 0x1bf   :  { %v6187_v61 = vpop.f32.mrf.mxu1 }
 0x1c0   :  { %6679 = vtanh.f32 %v1446_v60 }
 0x1cd   :  { %v6680_v62 = vpop.eup %6679 }
 0x1ce   :  { %v1451_v63 = vsel %vm25_vm0, %v6680_v62, 0  ;;  %v2876_v62 = vsel %vm25_vm0, %v5737_v58, 0 }
 0x1cf   :  { %v7065_v1 = vand.u32 4294901760, %v1451_v63 }
 0x1d1   :  { %6208 = vmatmul.mubr.f32.vlgmr.msra.gmra.mxu1 %v7065_v1  ;;  %v7069_v2 = vsub.f32 %v1451_v63, %v7065_v1 }
 0x1d2   :  { %6222 = vmatpush3.msra.mxu1 %v6744_v4  ;;  %6229 = vmatprep.mubr.msk.f32.mxu1 %vm6710_vm1, %v6709_v3 }
 0x1d3   :  { %6223 = vmatprep.subr.mxu1 %v6709_v3  ;;  %v7076_v8 = vand.u32 4294901760, %v7069_v2 }
 0x1d4   :  { %6224 = vmatpush3.msra.mxu1 %v6746_v5 }
 0x1d5   :  { %6225 = vmatprep.subr.mxu1 %v6709_v3  ;;  %v1525_v10 = vsub.f32 %v7069_v2, %v7076_v8 }
 0x1d6   :  { %6226 = vmatpush3.msra.mxu1 %v6748_v6 }
 0x1d7   :  { %6227 = vmatprep.subr.mxu1 %v6709_v3  ;;  %v1526_v12 = vand.u32 4294901760, %v1525_v10 }
 0x1d8   :  { %6228 = vmatpush3.msra.mxu1 %v6757_v9 }
 0x1d9   :  { %6230 = vmatmul.mubr.f32.vlgmr.msra.gmra.mxu1 %v7076_v8  ;;  %6243 = vmatprep.subr.mxu1 %v6709_v3 }
 0x1da   :  { %6197 = vmatmul.mubr.f32.vlgmr.msra.gmra.mxu0 %v1526_v12  ;;  %6244 = vmatpush3.msra.mxu1 %v6744_v4 }
 0x1db   :  { %6211 = vmatpush3.msra.mxu0 %v6766_v11  ;;  %6245 = vmatprep.subr.mxu1 %v6709_v3 }
 0x1dc   :  { %6212 = vmatprep.subr.mxu0 %v6709_v3  ;;  %6246 = vmatpush3.msra.mxu1 %v6746_v5 }
 0x1dd   :  { %6213 = vmatpush3.msra.mxu0 %v6771_v13  ;;  %6247 = vmatprep.subr.mxu1 %v6709_v3 }
 0x1de   :  { %6214 = vmatprep.subr.mxu0 %v6709_v3  ;;  %6248 = vmatpush3.msra.mxu1 %v6748_v6 }
 0x1df   :  { %6215 = vmatpush3.msra.mxu0 %v6774_v14  ;;  %6249 = vmatprep.subr.mxu1 %v6709_v3 }
 0x1e0   :  { %6216 = vmatprep.subr.mxu0 %v6709_v3  ;;  %6218 = vmatprep.mubr.msk.f32.mxu0 %vm6710_vm1, %v6709_v3 }
 0x1e1   :  { %6217 = vmatpush3.msra.mxu0 %v6778_v15  ;;  %6250 = vmatpush3.msra.mxu1 %v6757_v9 }
 0x1e2   :  { %6251 = vmatprep.mubr.msk.f32.mxu1 %vm6710_vm1, %v6709_v3  ;;  %6219 = vmatmul.mubr.f32.vlgmr.msra.gmra.mxu0 %v7069_v2 }
 0x1e3   :  { %6232 = vmatprep.subr.mxu0 %v6709_v3  ;;  %6252 = vmatmul.mubr.f32.vlgmr.msra.gmra.mxu1 %v7065_v1 }
 0x1e4   :  { %6265 = vmatprep.subr.mxu1 %v6709_v3  ;;  %6233 = vmatpush3.msra.mxu0 %v6782_v16 }
 0x1e5   :  { %6266 = vmatpush3.msra.mxu1 %v6905_v43  ;;  %6234 = vmatprep.subr.mxu0 %v6709_v3 }
 0x1e6   :  { %6267 = vmatprep.subr.mxu1 %v6709_v3  ;;  %6235 = vmatpush3.msra.mxu0 %v6788_v18 }
 0x1e7   :  { %6268 = vmatpush3.msra.mxu1 %v6913_v45  ;;  %6236 = vmatprep.subr.mxu0 %v6709_v3 }
 0x1e8   :  { %6269 = vmatprep.subr.mxu1 %v6709_v3  ;;  %6237 = vmatpush3.msra.mxu0 %v6791_v19 }
 0x1e9   :  { %6270 = vmatpush3.msra.mxu1 %v6953_v53  ;;  %6238 = vmatprep.subr.mxu0 %v6709_v3 }
 0x1ea   :  { %6271 = vmatprep.subr.mxu1 %v6709_v3  ;;  %6239 = vmatpush3.msra.mxu0 %v6795_v20 }
 0x1eb   :  { %6240 = vmatprep.mubr.msk.f32.mxu0 %vm6710_vm1, %v6709_v3  ;;  %6272 = vmatpush3.msra.mxu1 %v6960_v55 }
 0x1ec   :  { %6273 = vmatprep.mubr.msk.f32.mxu1 %vm6710_vm1, %v6709_v3  ;;  %6241 = vmatmul.mubr.f32.vlgmr.msra.gmra.mxu0 %v7065_v1 }
 0x1ed   :  { %6254 = vmatprep.subr.mxu0 %v6709_v3  ;;  %6274 = vmatmul.mubr.f32.vlgmr.msra.gmra.mxu1 %v7065_v1 }
 0x1ee   :  { %6287 = vmatprep.subr.mxu1 %v6709_v3  ;;  %6255 = vmatpush3.msra.mxu0 %v6846_v34 }
 0x1ef   :  { %6288 = vmatpush3.msra.mxu1 %v6846_v34  ;;  %6256 = vmatprep.subr.mxu0 %v6709_v3 }
 0x1f0   :  { %6289 = vmatprep.subr.mxu1 %v6709_v3  ;;  %6257 = vmatpush3.msra.mxu0 %v6853_v35 }
 0x1f1   :  { %6290 = vmatpush3.msra.mxu1 %v6853_v35  ;;  %6258 = vmatprep.subr.mxu0 %v6709_v3 }
 0x1f2   :  { %6291 = vmatprep.subr.mxu1 %v6709_v3  ;;  %6259 = vmatpush3.msra.mxu0 %v6911_v44 }
 0x1f3   :  { %6292 = vmatpush3.msra.mxu1 %v6911_v44  ;;  %6260 = vmatprep.subr.mxu0 %v6709_v3 }
 0x1f4   :  { %6293 = vmatprep.subr.mxu1 %v6709_v3  ;;  %6261 = vmatpush3.msra.mxu0 %v6930_v47 }
 0x1f5   :  { %6262 = vmatprep.mubr.msk.f32.mxu0 %vm6710_vm1, %v6709_v3  ;;  %6294 = vmatpush3.msra.mxu1 %v6930_v47 }
 0x1f6   :  { %6295 = vmatprep.mubr.msk.f32.mxu1 %vm6710_vm1, %v6709_v3  ;;  %6263 = vmatmul.mubr.f32.vlgmr.msra.gmra.mxu0 %v1526_v12 }
 0x1f7   :  { %6276 = vmatprep.subr.mxu0 %v6709_v3  ;;  %6296 = vmatmul.mubr.f32.vlgmr.msra.gmra.mxu1 %v7076_v8 }
 0x1f8   :  { %6309 = vmatprep.subr.mxu1 %v6709_v3  ;;  %6277 = vmatpush3.msra.mxu0 %v6860_v36 }
 0x1f9   :  { %6310 = vmatpush3.msra.mxu1 %v6846_v34  ;;  %6278 = vmatprep.subr.mxu0 %v6709_v3 }
 0x1fa   :  { %6311 = vmatprep.subr.mxu1 %v6709_v3  ;;  %6279 = vmatpush3.msra.mxu0 %v6867_v37 }
 0x1fb   :  { %6312 = vmatpush3.msra.mxu1 %v6853_v35  ;;  %6280 = vmatprep.subr.mxu0 %v6709_v3 }
 0x1fc   :  { %6313 = vmatprep.subr.mxu1 %v6709_v3  ;;  %6281 = vmatpush3.msra.mxu0 %v6933_v48 }
 0x1fd   :  { %6314 = vmatpush3.msra.mxu1 %v6911_v44  ;;  %6282 = vmatprep.subr.mxu0 %v6709_v3 }
 0x1fe   :  { %6315 = vmatprep.subr.mxu1 %v6709_v3  ;;  %6283 = vmatpush3.msra.mxu0 %v6940_v50 }
 0x1ff   :  { %6284 = vmatprep.mubr.msk.f32.mxu0 %vm6710_vm1, %v6709_v3  ;;  %6316 = vmatpush3.msra.mxu1 %v6930_v47 }
 0x200   :  { %6317 = vmatprep.mubr.msk.f32.mxu1 %vm6710_vm1, %v6709_v3  ;;  %6285 = vmatmul.mubr.f32.vlgmr.msra.gmra.mxu0 %v7069_v2  ;;  %v7193_v2 = vand.u32 4294901760, %v2876_v62 }
 0x201   :  { %6298 = vmatprep.subr.mxu0 %v6709_v3  ;;  %6318 = vmatmul.mubr.f32.vlgmr.msra.gmra.mxu1 %v7065_v1 }
 0x202   :  { %6299 = vmatpush3.msra.mxu0 %v6875_v38  ;;  %6306 = vmatprep.mubr.msk.f32.mxu0 %vm6710_vm1, %v6709_v3 }
 0x203   :  { %6300 = vmatprep.subr.mxu0 %v6709_v3  ;;  %6325 = vmatprep.subr.mxu1 %v6709_v3 }
 0x204   :  { %6301 = vmatpush3.msra.mxu0 %v6882_v39  ;;  %6327 = vmatprep.mubr.msk.f32.mxu1 %vm6710_vm1, %v6709_v3 }
 0x205   :  { %6302 = vmatprep.subr.mxu0 %v6709_v3 }
 0x206   :  { %6303 = vmatpush3.msra.mxu0 %v6937_v49 }
 0x207   :  { %6304 = vmatprep.subr.mxu0 %v6709_v3 }
 0x208   :  { %6305 = vmatpush3.msra.mxu0 %v6947_v52 }
 0x209   :  { %6307 = vmatmul.mubr.f32.vlgmr.msra.gmra.mxu0 %v7065_v1  ;;  %6320 = vmatprep.subr.mxu0 %v6709_v3 }
 0x20a   :  { %6322 = vmatprep.mubr.msk.f32.mxu0 %vm6710_vm1, %v6709_v3 }
 0x291   :  { %v1619_v21 = vpop.f32.mrf.mxu1 }
 0x293   :  { %v6209_v22 = vpop.f32.mrf.mxu1 }
 0x299   :  { %v1776_v23 = vpop.f32.mrf.mxu1 }
 0x29a   :  { %v1528_v24 = vpop.f32.mrf.mxu0 }
 0x29b   :  { %v6231_v26 = vpop.f32.mrf.mxu1  ;;  %v1620_v41 = vadd.f32 %v1619_v21, %v1528_v24 }
 0x29c   :  { %v6198_v28 = vpop.f32.mrf.mxu0 }
 0x2a2   :  { %v1699_v29 = vpop.f32.mrf.mxu0 }
 0x2a3   :  { %v1934_v33 = vpop.f32.mrf.mxu1  ;;  %v1700_v46 = vadd.f32 %v1699_v29, %v1620_v41 }
 0x2a4   :  { %v6220_v40 = vpop.f32.mrf.mxu0 }
 0x2a5   :  { %v6253_v42 = vpop.f32.mrf.mxu1  ;;  %v1777_v51 = vadd.f32 %v1776_v23, %v1700_v46  ;;  %v7201_v23 = vsub.f32 %v2876_v62, %v7193_v2 }
 0x2a7   :  { %v7208_v28 = vand.u32 4294901760, %v7201_v23 }
 0x2ac   :  { %v1859_v54 = vpop.f32.mrf.mxu0 }
 0x2ad   :  { %v1860_v56 = vadd.f32 %v1859_v54, %v1777_v51  ;;  %v2104_v57 = vpop.f32.mrf.mxu1 }
 0x2ae   :  { %v6242_v59 = vpop.f32.mrf.mxu0 }
 0x2af   :  { %v1935_v60 = vadd.f32 %v1934_v33, %v1860_v56  ;;  %v6275_v61 = vpop.f32.mrf.mxu1 }
 0x2b1   :  { %v2454_v63 = vand.u32 4294901760, %v1935_v60 }
 0x2b3   :  { %v2531_v1 = vsub.f32 %v1935_v60, %v2454_v63  ;;  %6321 = vmatpush3.msra.mxu0 %v2454_v63 }
 0x2b4   :  { %6323 = vmatmul.mubr.f32.vlgmr.msra.gmra.mxu0 %v7022_v32  ;;  %6330 = vmatprep.subr.mxu0 %v6709_v3 }
 0x2b5   :  { %6331 = vmatpush3.msra.mxu0 %v2531_v1  ;;  %6332 = vmatprep.mubr.msk.f32.mxu0 %vm6710_vm1, %v6709_v3  ;;  %v2532_v8 = vand.u32 4294901760, %v2531_v1 }
 0x2b6   :  { %v2013_v10 = vpop.f32.mrf.mxu0  ;;  %6340 = vmatprep.subr.mxu0 %v6709_v3 }
 0x2b7   :  { %v2105_v12 = vadd.f32 %v2104_v57, %v2013_v10  ;;  %v2261_v21 = vpop.f32.mrf.mxu1  ;;  %v2533_v22 = vsub.f32 %v2531_v1, %v2532_v8 }
 0x2b8   :  { %v6264_v24 = vpop.f32.mrf.mxu0  ;;  %6333 = vmatmul.mubr.f32.vlgmr.msra.gmra.mxu0 %v7015_v7  ;;  %v2950_v7 = vsub.f32 %v7201_v23, %v7208_v28 }
 0x2b9   :  { %v6297_v32 = vpop.f32.mrf.mxu1  ;;  %6341 = vmatpush3.msra.mxu0 %v2532_v8  ;;  %v2534_v26 = vand.u32 4294901760, %v2533_v22  ;;  %6342 = vmatprep.mubr.msk.f32.mxu0 %vm6710_vm1, %v6709_v3 }
 0x2ba   :  { %6350 = vmatprep.subr.mxu0 %v6709_v3 }
 0x2bb   :  { %6326 = vmatpush3.msra.mxu1 %v2534_v26 }
 0x2bc   :  { %6328 = vmatmul.mubr.f32.vlgmr.msra.gmra.mxu1 %v7012_v0  ;;  %6335 = vmatprep.subr.mxu1 %v6709_v3 }
 0x2bd   :  { %6336 = vmatpush3.msra.mxu1 %v2454_v63  ;;  %6343 = vmatmul.mubr.f32.vlgmr.msra.gmra.mxu0 %v7012_v0 }
 0x2be   :  { %6351 = vmatpush3.msra.mxu0 %v6744_v4  ;;  %6337 = vmatprep.mubr.msk.f32.mxu1 %vm6710_vm1, %v6709_v3 }
 0x2bf   :  { %6345 = vmatprep.subr.mxu1 %v6709_v3  ;;  %6352 = vmatprep.subr.mxu0 %v6709_v3 }
 0x2c0   :  { %v2184_v29 = vpop.f32.mrf.mxu0  ;;  %6338 = vmatmul.mubr.f32.vlgmr.msra.gmra.mxu1 %v7018_v17  ;;  %6353 = vmatpush3.msra.mxu0 %v6746_v5  ;;  %v7228_v17 = vand.u32 4294901760, %v2950_v7 }
 0x2c1   :  { %v2185_v33 = vadd.f32 %v2184_v29, %v2105_v12  ;;  %v2419_v40 = vpop.f32.mrf.mxu1  ;;  %6346 = vmatpush3.msra.mxu1 %v2454_v63  ;;  %6354 = vmatprep.subr.mxu0 %v6709_v3  ;;  %v5736_v29 = vld [vmem:[%s7568_s0 + $0x8] sm:$0xff]  ;;  %s6711_s0 = smov [#allocation2]  }
 0x2c2   :  { %v6286_v41 = vpop.f32.mrf.mxu0  ;;  %6355 = vmatpush3.msra.mxu0 %v6748_v6  ;;  %6347 = vmatprep.mubr.msk.f32.mxu1 %vm6710_vm1, %v6709_v3  ;;  %s5725_s7 = sshll.u32 %s6711_s0, 4  ;;  %s5726_s7 = int_to_ptr.vmem [resolvable:$true] %s5725_s7 }
 0x2c3   :  { %v6319_v42 = vpop.f32.mrf.mxu1  ;;  %6356 = vmatprep.subr.mxu0 %v6709_v3  ;;  %6361 = vmatprep.subr.mxu1 %v6709_v3  ;;  %v2262_v46 = vadd.f32 %v2261_v21, %v2185_v33  ;;  %v3849_v41 = vsel %vm999_vm2, %v5736_v29, 0  ;;  %s6687_s8 = scalar_lea.vmem %s5726_s7, 256  ;;  %p6692_p1 = scmp.lt.s32.totalorder %s5726_s7, %s5726_s7 }
 0x2c4   :  { %6348 = vmatmul.mubr.f32.vlgmr.msra.gmra.mxu1 %v7012_v0  ;;  %6357 = vmatpush3.msra.mxu0 %v6757_v9  ;;  %p6688_p0 = scmp.ne.s32.totalorder %s5726_s7, %s6687_s8  ;;  %p6693_p2 = scmp.lt.s32.totalorder %s6687_s8, %s6687_s8 }
 0x2c5   :  { %6362 = vmatpush3.msra.mxu1 %v6809_v25  ;;  %6358 = vmatprep.mubr.msk.f32.mxu0 %vm6710_vm1, %v6709_v3 }
 0x2c6   :  { %6363 = vmatprep.subr.mxu1 %v6709_v3  ;;  %6372 = vmatprep.subr.mxu0 %v6709_v3  ;;  %p6694_p3 = por %p6693_p2, %p6692_p1 }
 0x2c7   :  { %6359 = vmatmul.mubr.f32.vlgmr.msra.gmra.mxu0 %v7228_v17  ;;  %6364 = vmatpush3.msra.mxu1 %v6813_v27 }
 0x2c8   :  { %6373 = vmatpush3.msra.mxu0 %v6766_v11  ;;  %6365 = vmatprep.subr.mxu1 %v6709_v3  ;;  %p6695_p4 = pnand %p6694_p3, %p6688_p0 }
 0x2c9   :  { %v2344_v0 = vpop.f32.mrf.mxu0  ;;  %6374 = vmatprep.subr.mxu0 %v6709_v3  ;;  %6366 = vmatpush3.msra.mxu1 %v6821_v30 }
 0x2ca   :  { %v2345_v51 = vadd.f32 %v2344_v0, %v2262_v46  ;;  %6375 = vmatpush3.msra.mxu0 %v6771_v13  ;;  %6367 = vmatprep.subr.mxu1 %v6709_v3 }
 0x2cb   :  { %v6308_v54 = vpop.f32.mrf.mxu0  ;;  %6376 = vmatprep.subr.mxu0 %v6709_v3  ;;  %6368 = vmatpush3.msra.mxu1 %v6826_v31 }
 0x2cc   :  { %6369 = vmatprep.mubr.msk.f32.mxu1 %vm6710_vm1, %v6709_v3  ;;  %6377 = vmatpush3.msra.mxu0 %v6774_v14  ;;  %v7250_v56 = vadd.f32 %v2419_v40, %v2345_v51 }
 0x2cd   :  { %6370 = vmatmul.mubr.f32.vlgmr.msra.gmra.mxu1 %v7193_v2  ;;  %6378 = vmatprep.subr.mxu0 %v6709_v3 }
 0x2ce   :  { %6383 = vmatprep.subr.mxu1 %v6709_v3  ;;  %6379 = vmatpush3.msra.mxu0 %v6778_v15 }
 0x2cf   :  { %6380 = vmatprep.mubr.msk.f32.mxu0 %vm6710_vm1, %v6709_v3  ;;  %6384 = vmatpush3.msra.mxu1 %v6744_v4 }
 0x2d0   :  { %6381 = vmatmul.mubr.f32.vlgmr.msra.gmra.mxu0 %v7201_v23  ;;  %6385 = vmatprep.subr.mxu1 %v6709_v3 }
 0x2d1   :  { %6394 = vmatprep.subr.mxu0 %v6709_v3  ;;  %6386 = vmatpush3.msra.mxu1 %v6746_v5 }
 0x2d2   :  { %6395 = vmatpush3.msra.mxu0 %v6782_v16  ;;  %6387 = vmatprep.subr.mxu1 %v6709_v3 }
 0x2d3   :  { %6396 = vmatprep.subr.mxu0 %v6709_v3  ;;  %6388 = vmatpush3.msra.mxu1 %v6748_v6 }
 0x2d4   :  { %6397 = vmatpush3.msra.mxu0 %v6788_v18  ;;  %6389 = vmatprep.subr.mxu1 %v6709_v3 }
 0x2d5   :  { %6398 = vmatprep.subr.mxu0 %v6709_v3  ;;  %6390 = vmatpush3.msra.mxu1 %v6757_v9 }
 0x2d6   :  { %6391 = vmatprep.mubr.msk.f32.mxu1 %vm6710_vm1, %v6709_v3  ;;  %6399 = vmatpush3.msra.mxu0 %v6791_v19 }
 0x2d7   :  { %6392 = vmatmul.mubr.f32.vlgmr.msra.gmra.mxu1 %v7208_v28  ;;  %6400 = vmatprep.subr.mxu0 %v6709_v3 }
 0x2d8   :  { %6405 = vmatprep.subr.mxu1 %v6709_v3  ;;  %6401 = vmatpush3.msra.mxu0 %v6795_v20 }
 0x2d9   :  { %6402 = vmatprep.mubr.msk.f32.mxu0 %vm6710_vm1, %v6709_v3  ;;  %6406 = vmatpush3.msra.mxu1 %v6744_v4 }
 0x2da   :  { %6403 = vmatmul.mubr.f32.vlgmr.msra.gmra.mxu0 %v7193_v2  ;;  %6407 = vmatprep.subr.mxu1 %v6709_v3 }
 0x2db   :  { %6408 = vmatpush3.msra.mxu1 %v6746_v5  ;;  %6413 = vmatprep.mubr.msk.f32.mxu1 %vm6710_vm1, %v6709_v3 }
 0x2dc   :  { %6409 = vmatprep.subr.mxu1 %v6709_v3  ;;  %6416 = vmatprep.subr.mxu0 %v6709_v3 }
 0x2dd   :  { %6410 = vmatpush3.msra.mxu1 %v6748_v6  ;;  %6417 = vmatpush3.msra.mxu0 %v6846_v34 }
 0x2de   :  { %6411 = vmatprep.subr.mxu1 %v6709_v3  ;;  %6418 = vmatprep.subr.mxu0 %v6709_v3 }
 0x2df   :  { %6412 = vmatpush3.msra.mxu1 %v6757_v9  ;;  %6419 = vmatpush3.msra.mxu0 %v6853_v35 }
 0x2e0   :  { %6414 = vmatmul.mubr.f32.vlgmr.msra.gmra.mxu1 %v7193_v2  ;;  %6427 = vmatprep.subr.mxu1 %v6709_v3 }
 0x2e1   :  { %6428 = vmatpush3.msra.mxu1 %v6905_v43  ;;  %6420 = vmatprep.subr.mxu0 %v6709_v3 }
 0x2e2   :  { %6429 = vmatprep.subr.mxu1 %v6709_v3  ;;  %6421 = vmatpush3.msra.mxu0 %v6911_v44 }
 0x2e3   :  { %6430 = vmatpush3.msra.mxu1 %v6913_v45  ;;  %6422 = vmatprep.subr.mxu0 %v6709_v3 }
 0x2e4   :  { %6431 = vmatprep.subr.mxu1 %v6709_v3  ;;  %6423 = vmatpush3.msra.mxu0 %v6930_v47 }
 0x2e5   :  { %6432 = vmatpush3.msra.mxu1 %v6953_v53  ;;  %6424 = vmatprep.mubr.msk.f32.mxu0 %vm6710_vm1, %v6709_v3 }
 0x2e6   :  { %6433 = vmatprep.subr.mxu1 %v6709_v3  ;;  %6438 = vmatprep.subr.mxu0 %v6709_v3 }
 0x2e7   :  { %6425 = vmatmul.mubr.f32.vlgmr.msra.gmra.mxu0 %v7228_v17  ;;  %6434 = vmatpush3.msra.mxu1 %v6960_v55  ;;  %v7368_v17 = vand.u32 4294901760, %v3849_v41 }
 0x2e8   :  { %6439 = vmatpush3.msra.mxu0 %v6860_v36  ;;  %6435 = vmatprep.mubr.msk.f32.mxu1 %vm6710_vm1, %v6709_v3 }
 0x2e9   :  { %6440 = vmatprep.subr.mxu0 %v6709_v3  ;;  %6449 = vmatprep.subr.mxu1 %v6709_v3  ;;  %v7372_v54 = vsub.f32 %v3849_v41, %v7368_v17 }
 0x2ea   :  { %6436 = vmatmul.mubr.f32.vlgmr.msra.gmra.mxu1 %v7193_v2  ;;  %6441 = vmatpush3.msra.mxu0 %v6867_v37 }
 0x2eb   :  { %6450 = vmatpush3.msra.mxu1 %v6846_v34  ;;  %6442 = vmatprep.subr.mxu0 %v6709_v3 }
 0x2ec   :  { %6451 = vmatprep.subr.mxu1 %v6709_v3  ;;  %6443 = vmatpush3.msra.mxu0 %v6933_v48 }
 0x2ed   :  { %6452 = vmatpush3.msra.mxu1 %v6853_v35  ;;  %6444 = vmatprep.subr.mxu0 %v6709_v3 }
 0x2ee   :  { %6453 = vmatprep.subr.mxu1 %v6709_v3  ;;  %6445 = vmatpush3.msra.mxu0 %v6940_v50 }
 0x2ef   :  { %6454 = vmatpush3.msra.mxu1 %v6911_v44  ;;  %6446 = vmatprep.mubr.msk.f32.mxu0 %vm6710_vm1, %v6709_v3 }
 0x2f0   :  { %6455 = vmatprep.subr.mxu1 %v6709_v3  ;;  %6460 = vmatprep.subr.mxu0 %v6709_v3 }
 0x2f1   :  { %6447 = vmatmul.mubr.f32.vlgmr.msra.gmra.mxu0 %v7201_v23  ;;  %6456 = vmatpush3.msra.mxu1 %v6930_v47 }
 0x2f2   :  { %6461 = vmatpush3.msra.mxu0 %v6875_v38  ;;  %6457 = vmatprep.mubr.msk.f32.mxu1 %vm6710_vm1, %v6709_v3 }
 0x2f3   :  { %6462 = vmatprep.subr.mxu0 %v6709_v3  ;;  %6471 = vmatprep.subr.mxu1 %v6709_v3 }
 0x2f4   :  { %6458 = vmatmul.mubr.f32.vlgmr.msra.gmra.mxu1 %v7208_v28  ;;  %6463 = vmatpush3.msra.mxu0 %v6882_v39 }
 0x2f5   :  { %6472 = vmatpush3.msra.mxu1 %v6846_v34  ;;  %6464 = vmatprep.subr.mxu0 %v6709_v3 }
 0x2f6   :  { %6473 = vmatprep.subr.mxu1 %v6709_v3  ;;  %6465 = vmatpush3.msra.mxu0 %v6937_v49 }
 0x2f7   :  { %6474 = vmatpush3.msra.mxu1 %v6853_v35  ;;  %6466 = vmatprep.subr.mxu0 %v6709_v3 }
 0x2f8   :  { %6475 = vmatprep.subr.mxu1 %v6709_v3  ;;  %6467 = vmatpush3.msra.mxu0 %v6947_v52 }
 0x2f9   :  { %6468 = vmatprep.mubr.msk.f32.mxu0 %vm6710_vm1, %v6709_v3  ;;  %6476 = vmatpush3.msra.mxu1 %v6911_v44 }
 0x2fa   :  { %6469 = vmatmul.mubr.f32.vlgmr.msra.gmra.mxu0 %v7193_v2  ;;  %6477 = vmatprep.subr.mxu1 %v6709_v3 }
 0x2fb   :  { %6478 = vmatpush3.msra.mxu1 %v6930_v47  ;;  %6479 = vmatprep.mubr.msk.f32.mxu1 %vm6710_vm1, %v6709_v3 }
 0x2fc   :  { %6480 = vmatmul.mubr.f32.vlgmr.msra.gmra.mxu1 %v7193_v2  ;;  %6482 = vmatprep.subr.mxu0 %v6709_v3 }
 0x2fd   :  { %6484 = vmatprep.mubr.msk.f32.mxu0 %vm6710_vm1, %v6709_v3  ;;  %6487 = vmatprep.subr.mxu1 %v6709_v3 }
 0x2fe   :  { %6489 = vmatprep.mubr.msk.f32.mxu1 %vm6710_vm1, %v6709_v3 }
 0x374   :  { %v2495_v57 = vpop.f32.mrf.mxu0 }
 0x375   :  { %v2496_v61 = vadd.f32 %v2495_v57, %v7250_v56 }
 0x376   :  { %v6324_v58 = vpop.f32.mrf.mxu0 }
 0x378   :  { %v2645_v59 = vpop.f32.mrf.mxu0 }
 0x37a   :  { %v6334_v60 = vpop.f32.mrf.mxu0 }
 0x37b   :  { %v7375_v60 = vand.u32 4294901760, %v7372_v54 }
 0x37c   :  { %v2571_v62 = vpop.f32.mrf.mxu1 }
 0x37d   :  { %v2572_v63 = vadd.f32 %v2571_v62, %v2496_v61  ;;  %v2793_v1 = vpop.f32.mrf.mxu0 }
 0x37e   :  { %v6329_v2 = vpop.f32.mrf.mxu1 }
 0x37f   :  { %v2646_v8 = vadd.f32 %v2645_v59, %v2572_v63  ;;  %v6344_v10 = vpop.f32.mrf.mxu0  ;;  %v3920_v63 = vsub.f32 %v7372_v54, %v7375_v60 }
 0x380   :  { %v2719_v12 = vpop.f32.mrf.mxu1 }
 0x381   :  { %v2720_v21 = vadd.f32 %v2719_v12, %v2646_v8  ;;  %v7379_v12 = vand.u32 4294901760, %v3920_v63 }
 0x382   :  { %v6339_v22 = vpop.f32.mrf.mxu1 }
 0x383   :  { %v2794_v23 = vadd.f32 %v2793_v1, %v2720_v21 }
 0x384   :  { %v2865_v24 = vpop.f32.mrf.mxu1 }
 0x385   :  { %v2866_v32 = vadd.f32 %v2865_v24, %v2794_v23 }
 0x386   :  { %v6349_v26 = vpop.f32.mrf.mxu1 }
 0x387   :  { %6681 = vtanh.f32 %v2866_v32  ;;  %v2953_v28 = vpop.f32.mrf.mxu0 }
 0x389   :  { %v6360_v7 = vpop.f32.mrf.mxu0 }
 0x38d   :  { %v3044_v33 = vpop.f32.mrf.mxu1 }
 0x38e   :  { %v3045_v51 = vadd.f32 %v3044_v33, %v2953_v28 }
 0x38f   :  { %v6371_v40 = vpop.f32.mrf.mxu1 }
 0x390   :  { %v3124_v42 = vpop.f32.mrf.mxu0 }
 0x391   :  { %v3125_v57 = vadd.f32 %v3124_v42, %v3045_v51 }
 0x392   :  { %v6382_v46 = vpop.f32.mrf.mxu0 }
 0x394   :  { %v6682_v0 = vpop.eup %6681 }
 0x395   :  { %2870 = vst.msk [vmem:[#allocation2] sm:$0xff] %vm25_vm0, %v6682_v0 }
 0x397   :  { %v3201_v56 = vpop.f32.mrf.mxu1 }
 0x398   :  { %v3202_v61 = vadd.f32 %v3201_v56, %v3125_v57 }
 0x399   :  { %v6393_v58 = vpop.f32.mrf.mxu1 }
 0x39a   :  { %v3284_v59 = vpop.f32.mrf.mxu0 }
 0x39b   :  { %v3285_v1 = vadd.f32 %v3284_v59, %v3202_v61 }
 0x39c   :  { %v6404_v62 = vpop.f32.mrf.mxu0 }
 0x3a0   :  { %v3359_v2 = vpop.f32.mrf.mxu1 }
 0x3a1   :  { %v3360_v8 = vadd.f32 %v3359_v2, %v3285_v1 }
 0x3a2   :  { %v6415_v10 = vpop.f32.mrf.mxu1 }
 0x3a3   :  { %v3882_v21 = vand.u32 4294901760, %v3360_v8 }
 0x3a5   :  { %v3959_v22 = vsub.f32 %v3360_v8, %v3882_v21  ;;  %6483 = vmatpush3.msra.mxu0 %v3882_v21 }
 0x3a6   :  { %6485 = vmatmul.mubr.f32.vlgmr.msra.gmra.mxu0 %v7379_v12  ;;  %6492 = vmatprep.subr.mxu0 %v6709_v3 }
 0x3a7   :  { %v3960_v23 = vand.u32 4294901760, %v3959_v22  ;;  %6493 = vmatpush3.msra.mxu0 %v3959_v22  ;;  %6494 = vmatprep.mubr.msk.f32.mxu0 %vm6710_vm1, %v6709_v3  ;;  %v3438_v24 = vpop.f32.mrf.mxu0 }
 0x3a8   :  { %6502 = vmatprep.subr.mxu0 %v6709_v3 }
 0x3a9   :  { %v3961_v32 = vsub.f32 %v3959_v22, %v3960_v23  ;;  %v6426_v26 = vpop.f32.mrf.mxu0 }
 0x3aa   :  { %6495 = vmatmul.mubr.f32.vlgmr.msra.gmra.mxu0 %v7372_v54  ;;  %v3529_v28 = vpop.f32.mrf.mxu1 }
 0x3ab   :  { %6503 = vmatpush3.msra.mxu0 %v3960_v23  ;;  %v3962_v7 = vand.u32 4294901760, %v3961_v32  ;;  %6504 = vmatprep.mubr.msk.f32.mxu0 %vm6710_vm1, %v6709_v3  ;;  %v3530_v29 = vadd.f32 %v3529_v28, %v3438_v24 }
 0x3ac   :  { %v6437_v33 = vpop.f32.mrf.mxu1  ;;  %6512 = vmatprep.subr.mxu0 %v6709_v3 }
 0x3ad   :  { %6488 = vmatpush3.msra.mxu1 %v3962_v7 }
 0x3ae   :  { %6490 = vmatmul.mubr.f32.vlgmr.msra.gmra.mxu1 %v7368_v17  ;;  %6497 = vmatprep.subr.mxu1 %v6709_v3 }
 0x3af   :  { %6498 = vmatpush3.msra.mxu1 %v3882_v21  ;;  %6499 = vmatprep.mubr.msk.f32.mxu1 %vm6710_vm1, %v6709_v3 }
 0x3b0   :  { %6507 = vmatprep.subr.mxu1 %v6709_v3  ;;  %6505 = vmatmul.mubr.f32.vlgmr.msra.gmra.mxu0 %v7368_v17 }
 0x3b1   :  { %v3609_v40 = vpop.f32.mrf.mxu0  ;;  %6513 = vmatpush3.msra.mxu0 %v6744_v4  ;;  %6520 = vmatprep.mubr.msk.f32.mxu0 %vm6710_vm1, %v6709_v3 }
 0x3b2   :  { %6500 = vmatmul.mubr.f32.vlgmr.msra.gmra.mxu1 %v7375_v60  ;;  %v3610_v41 = vadd.f32 %v3609_v40, %v3530_v29  ;;  %6514 = vmatprep.subr.mxu0 %v6709_v3 }
 0x3b3   :  { %6508 = vmatpush3.msra.mxu1 %v3882_v21  ;;  %6509 = vmatprep.mubr.msk.f32.mxu1 %vm6710_vm1, %v6709_v3  ;;  %v6448_v42 = vpop.f32.mrf.mxu0 }
 0x3b4   :  { %v3686_v46 = vpop.f32.mrf.mxu1  ;;  %6523 = vmatprep.subr.mxu1 %v6709_v3  ;;  %6515 = vmatpush3.msra.mxu0 %v6746_v5 }
 0x3b5   :  { %v3687_v0 = vadd.f32 %v3686_v46, %v3610_v41  ;;  %6516 = vmatprep.subr.mxu0 %v6709_v3 }
 0x3b6   :  { %6510 = vmatmul.mubr.f32.vlgmr.msra.gmra.mxu1 %v7368_v17  ;;  %v6459_v51 = vpop.f32.mrf.mxu1  ;;  %6517 = vmatpush3.msra.mxu0 %v6748_v6 }
 0x3b7   :  { %6524 = vmatpush3.msra.mxu1 %v6809_v25  ;;  %6531 = vmatprep.mubr.msk.f32.mxu1 %vm6710_vm1, %v6709_v3 }
 0x3b8   :  { %6525 = vmatprep.subr.mxu1 %v6709_v3  ;;  %6518 = vmatprep.subr.mxu0 %v6709_v3 }
 0x3b9   :  { %6526 = vmatpush3.msra.mxu1 %v6813_v27  ;;  %6519 = vmatpush3.msra.mxu0 %v6757_v9 }
 0x3ba   :  { %v3769_v56 = vpop.f32.mrf.mxu0  ;;  %6527 = vmatprep.subr.mxu1 %v6709_v3  ;;  %6534 = vmatprep.subr.mxu0 %v6709_v3 }
 0x3bb   :  { %v3770_v57 = vadd.f32 %v3769_v56, %v3687_v0  ;;  %6528 = vmatpush3.msra.mxu1 %v6821_v30 }
 0x3bc   :  { %v3844_v25 = vpop.f32.mrf.mxu1  ;;  %v6470_v58 = vpop.f32.mrf.mxu0  ;;  %6529 = vmatprep.subr.mxu1 %v6709_v3 }
 0x3bd   :  { %v3845_v59 = vadd.f32 %v3844_v25, %v3770_v57  ;;  %6530 = vmatpush3.msra.mxu1 %v6826_v31 }
 0x3be   :  { %v6481_v61 = vpop.f32.mrf.mxu1  ;;  %6545 = vmatprep.subr.mxu1 %v6709_v3 }
 0x466   :  { %v3923_v27 = vpop.f32.mrf.mxu0 }
 0x467   :  { %v3924_v2 = vadd.f32 %v3923_v27, %v3845_v59 }
 0x468   :  { %v6486_v62 = vpop.f32.mrf.mxu0 }
 0x46a   :  { %v4073_v63 = vpop.f32.mrf.mxu0 }
 0x46c   :  { %v6496_v1 = vpop.f32.mrf.mxu0 }
 0x46e   :  { %v3999_v8 = vpop.f32.mrf.mxu1 }
 0x46f   :  { %v4000_v10 = vadd.f32 %v3999_v8, %v3924_v2 }
 0x470   :  { %v6491_v21 = vpop.f32.mrf.mxu1  ;;  %v4221_v22 = vpop.f32.mrf.mxu0 }
 0x471   :  { %v4074_v30 = vadd.f32 %v4073_v63, %v4000_v10 }
 0x472   :  { %v4147_v23 = vpop.f32.mrf.mxu1  ;;  %v6506_v24 = vpop.f32.mrf.mxu0 }
 0x473   :  { %v4148_v32 = vadd.f32 %v4147_v23, %v4074_v30 }
 0x474   :  { %v6501_v26 = vpop.f32.mrf.mxu1 }
 0x475   :  { %v4222_v28 = vadd.f32 %v4221_v22, %v4148_v32 }
 0x476   :  { %v4293_v7 = vpop.f32.mrf.mxu1 }
 0x477   :  { %v4294_v31 = vadd.f32 %v4293_v7, %v4222_v28 }
 0x478   :  { %v6511_v29 = vpop.f32.mrf.mxu1 }
 0x479   :  { %6683 = vtanh.f32 %v4294_v31 }
 0x486   :  { %v6684_v33 = vpop.eup %6683 }
 0x487   :  { %v4299_v40 = vsel %vm25_vm0, %v6684_v33, 0 }
 0x488   :  { %v7422_v41 = vand.u32 4294901760, %v4299_v40 }
 0x48a   :  { %6532 = vmatmul.mubr.f32.vlgmr.msra.gmra.mxu1 %v7422_v41  ;;  %v7426_v42 = vsub.f32 %v4299_v40, %v7422_v41 }
 0x48b   :  { %6546 = vmatpush3.msra.mxu1 %v6744_v4  ;;  %6553 = vmatprep.mubr.msk.f32.mxu1 %vm6710_vm1, %v6709_v3 }
 0x48c   :  { %6547 = vmatprep.subr.mxu1 %v6709_v3  ;;  %v7433_v46 = vand.u32 4294901760, %v7426_v42 }
 0x48d   :  { %6548 = vmatpush3.msra.mxu1 %v6746_v5 }
 0x48e   :  { %6549 = vmatprep.subr.mxu1 %v6709_v3  ;;  %v4373_v0 = vsub.f32 %v7426_v42, %v7433_v46 }
 0x48f   :  { %6550 = vmatpush3.msra.mxu1 %v6748_v6 }
 0x490   :  { %6551 = vmatprep.subr.mxu1 %v6709_v3  ;;  %v4374_v51 = vand.u32 4294901760, %v4373_v0 }
 0x491   :  { %6552 = vmatpush3.msra.mxu1 %v6757_v9 }
 0x492   :  { %6554 = vmatmul.mubr.f32.vlgmr.msra.gmra.mxu1 %v7433_v46  ;;  %6567 = vmatprep.subr.mxu1 %v6709_v3 }
 0x493   :  { %6521 = vmatmul.mubr.f32.vlgmr.msra.gmra.mxu0 %v4374_v51  ;;  %6568 = vmatpush3.msra.mxu1 %v6744_v4 }
 0x494   :  { %6535 = vmatpush3.msra.mxu0 %v6766_v11  ;;  %6569 = vmatprep.subr.mxu1 %v6709_v3 }
 0x495   :  { %6536 = vmatprep.subr.mxu0 %v6709_v3  ;;  %6570 = vmatpush3.msra.mxu1 %v6746_v5 }
 0x496   :  { %6537 = vmatpush3.msra.mxu0 %v6771_v13  ;;  %6571 = vmatprep.subr.mxu1 %v6709_v3 }
 0x497   :  { %6538 = vmatprep.subr.mxu0 %v6709_v3  ;;  %6572 = vmatpush3.msra.mxu1 %v6748_v6 }
 0x498   :  { %6539 = vmatpush3.msra.mxu0 %v6774_v14  ;;  %6573 = vmatprep.subr.mxu1 %v6709_v3 }
 0x499   :  { %6540 = vmatprep.subr.mxu0 %v6709_v3  ;;  %6542 = vmatprep.mubr.msk.f32.mxu0 %vm6710_vm1, %v6709_v3 }
 0x49a   :  { %6541 = vmatpush3.msra.mxu0 %v6778_v15  ;;  %6574 = vmatpush3.msra.mxu1 %v6757_v9 }
 0x49b   :  { %6575 = vmatprep.mubr.msk.f32.mxu1 %vm6710_vm1, %v6709_v3  ;;  %6543 = vmatmul.mubr.f32.vlgmr.msra.gmra.mxu0 %v7426_v42 }
 0x49c   :  { %6556 = vmatprep.subr.mxu0 %v6709_v3  ;;  %6576 = vmatmul.mubr.f32.vlgmr.msra.gmra.mxu1 %v7422_v41 }
 0x49d   :  { %6589 = vmatprep.subr.mxu1 %v6709_v3  ;;  %6557 = vmatpush3.msra.mxu0 %v6782_v16 }
 0x49e   :  { %6590 = vmatpush3.msra.mxu1 %v6905_v43  ;;  %6558 = vmatprep.subr.mxu0 %v6709_v3 }
 0x49f   :  { %6591 = vmatprep.subr.mxu1 %v6709_v3  ;;  %6559 = vmatpush3.msra.mxu0 %v6788_v18 }
 0x4a0   :  { %6592 = vmatpush3.msra.mxu1 %v6913_v45  ;;  %6560 = vmatprep.subr.mxu0 %v6709_v3 }
 0x4a1   :  { %6593 = vmatprep.subr.mxu1 %v6709_v3  ;;  %6561 = vmatpush3.msra.mxu0 %v6791_v19 }
 0x4a2   :  { %6594 = vmatpush3.msra.mxu1 %v6953_v53  ;;  %6562 = vmatprep.subr.mxu0 %v6709_v3 }
 0x4a3   :  { %6595 = vmatprep.subr.mxu1 %v6709_v3  ;;  %6563 = vmatpush3.msra.mxu0 %v6795_v20 }
 0x4a4   :  { %6564 = vmatprep.mubr.msk.f32.mxu0 %vm6710_vm1, %v6709_v3  ;;  %6596 = vmatpush3.msra.mxu1 %v6960_v55 }
 0x4a5   :  { %6597 = vmatprep.mubr.msk.f32.mxu1 %vm6710_vm1, %v6709_v3  ;;  %6565 = vmatmul.mubr.f32.vlgmr.msra.gmra.mxu0 %v7422_v41 }
 0x4a6   :  { %6578 = vmatprep.subr.mxu0 %v6709_v3  ;;  %6598 = vmatmul.mubr.f32.vlgmr.msra.gmra.mxu1 %v7422_v41 }
 0x4a7   :  { %6611 = vmatprep.subr.mxu1 %v6709_v3  ;;  %6579 = vmatpush3.msra.mxu0 %v6846_v34 }
 0x4a8   :  { %6612 = vmatpush3.msra.mxu1 %v6846_v34  ;;  %6580 = vmatprep.subr.mxu0 %v6709_v3 }
 0x4a9   :  { %6613 = vmatprep.subr.mxu1 %v6709_v3  ;;  %6581 = vmatpush3.msra.mxu0 %v6853_v35 }
 0x4aa   :  { %6614 = vmatpush3.msra.mxu1 %v6853_v35  ;;  %6582 = vmatprep.subr.mxu0 %v6709_v3 }
 0x4ab   :  { %6615 = vmatprep.subr.mxu1 %v6709_v3  ;;  %6583 = vmatpush3.msra.mxu0 %v6911_v44 }
 0x4ac   :  { %6616 = vmatpush3.msra.mxu1 %v6911_v44  ;;  %6584 = vmatprep.subr.mxu0 %v6709_v3 }
 0x4ad   :  { %6617 = vmatprep.subr.mxu1 %v6709_v3  ;;  %6585 = vmatpush3.msra.mxu0 %v6930_v47 }
 0x4ae   :  { %6586 = vmatprep.mubr.msk.f32.mxu0 %vm6710_vm1, %v6709_v3  ;;  %6618 = vmatpush3.msra.mxu1 %v6930_v47 }
 0x4af   :  { %6619 = vmatprep.mubr.msk.f32.mxu1 %vm6710_vm1, %v6709_v3  ;;  %6587 = vmatmul.mubr.f32.vlgmr.msra.gmra.mxu0 %v4374_v51 }
 0x4b0   :  { %6600 = vmatprep.subr.mxu0 %v6709_v3  ;;  %6620 = vmatmul.mubr.f32.vlgmr.msra.gmra.mxu1 %v7433_v46 }
 0x4b1   :  { %6633 = vmatprep.subr.mxu1 %v6709_v3  ;;  %6601 = vmatpush3.msra.mxu0 %v6860_v36 }
 0x4b2   :  { %6634 = vmatpush3.msra.mxu1 %v6846_v34  ;;  %6602 = vmatprep.subr.mxu0 %v6709_v3 }
 0x4b3   :  { %6635 = vmatprep.subr.mxu1 %v6709_v3  ;;  %6603 = vmatpush3.msra.mxu0 %v6867_v37 }
 0x4b4   :  { %6636 = vmatpush3.msra.mxu1 %v6853_v35  ;;  %6604 = vmatprep.subr.mxu0 %v6709_v3 }
 0x4b5   :  { %6637 = vmatprep.subr.mxu1 %v6709_v3  ;;  %6605 = vmatpush3.msra.mxu0 %v6933_v48 }
 0x4b6   :  { %6638 = vmatpush3.msra.mxu1 %v6911_v44  ;;  %6606 = vmatprep.subr.mxu0 %v6709_v3 }
 0x4b7   :  { %6639 = vmatprep.subr.mxu1 %v6709_v3  ;;  %6607 = vmatpush3.msra.mxu0 %v6940_v50 }
 0x4b8   :  { %6608 = vmatprep.mubr.msk.f32.mxu0 %vm6710_vm1, %v6709_v3  ;;  %6640 = vmatpush3.msra.mxu1 %v6930_v47 }
 0x4b9   :  { %6641 = vmatprep.mubr.msk.f32.mxu1 %vm6710_vm1, %v6709_v3  ;;  %6609 = vmatmul.mubr.f32.vlgmr.msra.gmra.mxu0 %v7426_v42 }
 0x4ba   :  { %6622 = vmatprep.subr.mxu0 %v6709_v3  ;;  %6642 = vmatmul.mubr.f32.vlgmr.msra.gmra.mxu1 %v7422_v41 }
 0x4bb   :  { %6623 = vmatpush3.msra.mxu0 %v6875_v38  ;;  %6630 = vmatprep.mubr.msk.f32.mxu0 %vm6710_vm1, %v6709_v3 }
 0x4bc   :  { %6624 = vmatprep.subr.mxu0 %v6709_v3  ;;  %6649 = vmatprep.subr.mxu1 %v6709_v3 }
 0x4bd   :  { %6625 = vmatpush3.msra.mxu0 %v6882_v39  ;;  %6651 = vmatprep.mubr.msk.f32.mxu1 %vm6710_vm1, %v6709_v3 }
 0x4be   :  { %6626 = vmatprep.subr.mxu0 %v6709_v3 }
 0x4bf   :  { %6627 = vmatpush3.msra.mxu0 %v6937_v49 }
 0x4c0   :  { %6628 = vmatprep.subr.mxu0 %v6709_v3 }
 0x4c1   :  { %6629 = vmatpush3.msra.mxu0 %v6947_v52 }
 0x4c2   :  { %6631 = vmatmul.mubr.f32.vlgmr.msra.gmra.mxu0 %v7422_v41  ;;  %6644 = vmatprep.subr.mxu0 %v6709_v3 }
 0x4c3   :  { %6646 = vmatprep.mubr.msk.f32.mxu0 %vm6710_vm1, %v6709_v3 }
 0x54a   :  { %v4467_v4 = vpop.f32.mrf.mxu1 }
 0x54c   :  { %v6533_v5 = vpop.f32.mrf.mxu1 }
 0x552   :  { %v4624_v6 = vpop.f32.mrf.mxu1 }
 0x553   :  { %v4376_v9 = vpop.f32.mrf.mxu0 }
 0x554   :  { %v6555_v11 = vpop.f32.mrf.mxu1  ;;  %v4468_v18 = vadd.f32 %v4467_v4, %v4376_v9 }
 0x555   :  { %v6522_v13 = vpop.f32.mrf.mxu0 }
 0x55b   :  { %v4547_v14 = vpop.f32.mrf.mxu0 }
 0x55c   :  { %v4782_v15 = vpop.f32.mrf.mxu1  ;;  %v4548_v20 = vadd.f32 %v4547_v14, %v4468_v18 }
 0x55d   :  { %v6544_v16 = vpop.f32.mrf.mxu0 }
 0x55e   :  { %v6577_v19 = vpop.f32.mrf.mxu1  ;;  %v4625_v34 = vadd.f32 %v4624_v6, %v4548_v20 }
 0x565   :  { %v4707_v35 = vpop.f32.mrf.mxu0 }
 0x566   :  { %v4708_v36 = vadd.f32 %v4707_v35, %v4625_v34  ;;  %v4952_v37 = vpop.f32.mrf.mxu1 }
 0x567   :  { %v6566_v38 = vpop.f32.mrf.mxu0 }
 0x568   :  { %v4783_v39 = vadd.f32 %v4782_v15, %v4708_v36  ;;  %v6599_v43 = vpop.f32.mrf.mxu1 }
 0x56a   :  { %v5302_v44 = vand.u32 4294901760, %v4783_v39 }
 0x56c   :  { %v5379_v45 = vsub.f32 %v4783_v39, %v5302_v44  ;;  %6645 = vmatpush3.msra.mxu0 %v5302_v44 }
 0x56d   :  { %6647 = vmatmul.mubr.f32.vlgmr.msra.gmra.mxu0 %v7379_v12  ;;  %6654 = vmatprep.subr.mxu0 %v6709_v3 }
 0x56e   :  { %6655 = vmatpush3.msra.mxu0 %v5379_v45  ;;  %6656 = vmatprep.mubr.msk.f32.mxu0 %vm6710_vm1, %v6709_v3  ;;  %v5380_v47 = vand.u32 4294901760, %v5379_v45 }
 0x56f   :  { %v4861_v48 = vpop.f32.mrf.mxu0  ;;  %6664 = vmatprep.subr.mxu0 %v6709_v3 }
 0x570   :  { %v4953_v49 = vadd.f32 %v4952_v37, %v4861_v48  ;;  %v5109_v50 = vpop.f32.mrf.mxu1  ;;  %v5381_v52 = vsub.f32 %v5379_v45, %v5380_v47 }
 0x571   :  { %v6588_v53 = vpop.f32.mrf.mxu0  ;;  %6657 = vmatmul.mubr.f32.vlgmr.msra.gmra.mxu0 %v7372_v54 }
 0x572   :  { %v6621_v55 = vpop.f32.mrf.mxu1  ;;  %6665 = vmatpush3.msra.mxu0 %v5380_v47  ;;  %v5382_v56 = vand.u32 4294901760, %v5381_v52  ;;  %6666 = vmatprep.mubr.msk.f32.mxu0 %vm6710_vm1, %v6709_v3 }
 0x574   :  { %6650 = vmatpush3.msra.mxu1 %v5382_v56 }
 0x575   :  { %6652 = vmatmul.mubr.f32.vlgmr.msra.gmra.mxu1 %v7368_v17  ;;  %6659 = vmatprep.subr.mxu1 %v6709_v3 }
 0x576   :  { %6660 = vmatpush3.msra.mxu1 %v5302_v44  ;;  %6661 = vmatprep.mubr.msk.f32.mxu1 %vm6710_vm1, %v6709_v3 }
 0x577   :  { %6669 = vmatprep.subr.mxu1 %v6709_v3  ;;  %6667 = vmatmul.mubr.f32.vlgmr.msra.gmra.mxu0 %v7368_v17 }
 0x579   :  { %v5032_v54 = vpop.f32.mrf.mxu0  ;;  %6662 = vmatmul.mubr.f32.vlgmr.msra.gmra.mxu1 %v7375_v60 }
 0x57a   :  { %v5033_v12 = vadd.f32 %v5032_v54, %v4953_v49  ;;  %v5267_v57 = vpop.f32.mrf.mxu1  ;;  %6670 = vmatpush3.msra.mxu1 %v5302_v44  ;;  %6671 = vmatprep.mubr.msk.f32.mxu1 %vm6710_vm1, %v6709_v3 }
 0x57b   :  { %v6610_v25 = vpop.f32.mrf.mxu0 }
 0x57c   :  { %v6643_v58 = vpop.f32.mrf.mxu1  ;;  %v5110_v59 = vadd.f32 %v5109_v50, %v5033_v12 }
 0x57d   :  { %6672 = vmatmul.mubr.f32.vlgmr.msra.gmra.mxu1 %v7368_v17 }
 0x582   :  { %v5192_v61 = vpop.f32.mrf.mxu0 }
 0x583   :  { %v5193_v27 = vadd.f32 %v5192_v61, %v5110_v59 }
 0x584   :  { %v6632_v62 = vpop.f32.mrf.mxu0 }
 0x585   :  { %v5268_v63 = vadd.f32 %v5267_v57, %v5193_v27 }
 0x62d   :  { %v5343_v1 = vpop.f32.mrf.mxu0 }
 0x62e   :  { %v5344_v60 = vadd.f32 %v5343_v1, %v5268_v63 }
 0x62f   :  { %v6648_v2 = vpop.f32.mrf.mxu0 }
 0x631   :  { %v5493_v8 = vpop.f32.mrf.mxu0 }
 0x633   :  { %v6658_v10 = vpop.f32.mrf.mxu0 }
 0x635   :  { %v5419_v21 = vpop.f32.mrf.mxu1 }
 0x636   :  { %v5420_v22 = vadd.f32 %v5419_v21, %v5344_v60 }
 0x637   :  { %v6653_v30 = vpop.f32.mrf.mxu1  ;;  %v5641_v23 = vpop.f32.mrf.mxu0 }
 0x638   :  { %v5494_v24 = vadd.f32 %v5493_v8, %v5420_v22 }
 0x639   :  { %v5567_v3 = vpop.f32.mrf.mxu1  ;;  %v6668_v32 = vpop.f32.mrf.mxu0 }
 0x63a   :  { %v5568_v26 = vadd.f32 %v5567_v3, %v5494_v24 }
 0x63b   :  { %v6663_v28 = vpop.f32.mrf.mxu1 }
 0x63c   :  { %v5642_v7 = vadd.f32 %v5641_v23, %v5568_v26 }
 0x63d   :  { %v5713_v17 = vpop.f32.mrf.mxu1 }
 0x63e   :  { %v5714_v31 = vadd.f32 %v5713_v17, %v5642_v7 }
 0x63f   :  { %v6673_v29 = vpop.f32.mrf.mxu1 }
 0x640   :  { %6685 = vtanh.f32 %v5714_v31 }
 0x64d   :  { %v6686_v33 = vpop.eup %6685 }
 0x64e   :  { %5719 = vst.msk [vmem:[#allocation2 + $0x8] sm:$0xff] %vm25_vm0, %v6686_v33 }
 0x64f   :  { %6698 = shalt.err (!%p6695_p4)
}
 0x650   :  { %s6712_s9 = smov 128   ;;  %s6713_s10 = smov 8  }
 0x651   :  { %5731 = dma.vmem_to_hbm [thread:$0]  %s5726_s7, 256, %s7571_s3, [#allocation3], %s6712_s9, %s6712_s9, %s6713_s10  }
 0x652   :  { %6707 = dma.done.wait [#allocation3], 256  }
 0x653   :  { %6708 = vsyncadd [#allocation3], 4294967040 }
 0x654   :  { %5735 = vsyncpa [#allocation3], 1 }

</bundles_post_ra>
